<compile_context>
chip_gen: v6e
topology: v6e:2x2x1
jax: 0.10.0
libtpu: 0.0.40
codegen_flags: <defaults>
</compile_context>

<pallas_src>
import functools

import jax
import jax.numpy as jnp
from jax.experimental import pallas as pl
from jax.experimental.pallas import tpu as pltpu

PREF_TILE = 512  # preferred row / contraction tile (multiple of 128)

_COMPILER_PARAMS = pltpu.CompilerParams(
    dimension_semantics=("parallel", "arbitrary"),
    vmem_limit_bytes=32 * 1024 * 1024,
)


# ----------------------------------------------------------------------------
# Tiling / padding helpers
# ----------------------------------------------------------------------------
def _round_up(n, m):
    return ((n + m - 1) // m) * m


def _pick_tile(n, pref=PREF_TILE):
    """Tile size + padded extent for a node axis (tile divides padded n)."""
    if n >= pref:
        return pref, _round_up(n, pref)
    t = _round_up(n, 8)
    return t, t


def _pad2(x, rows, cols=None):
    r = rows - x.shape[0]
    c = 0 if cols is None else cols - x.shape[1]
    if r == 0 and c == 0:
        return x
    return jnp.pad(x, ((0, r), (0, c)))


# ----------------------------------------------------------------------------
# EvolutionModule, his+ctx fused, one node side per pallas_call.
#   out_s = tanh(exp(-|lam_s|*t_diff) * x_self_s + (A_eff @ x_other_s) @ W_s + embed)
# for s in {his, ctx};  A_eff = adj (user side) or adj^T (item side, in-kernel).
# ----------------------------------------------------------------------------
def _evolve_kernel(lam_ref, adj_h_ref, adj_c_ref, xo_h_ref, xo_c_ref,
                   xs_h_ref, xs_c_ref, td_ref, e_ref, w_h_ref, w_c_ref,
                   out_h_ref, out_c_ref, acc_h_ref, acc_c_ref, *,
                   transpose_adj):
    k = pl.program_id(1)

    @pl.when(k == 0)
    def _():
        acc_h_ref[...] = jnp.zeros_like(acc_h_ref)
        acc_c_ref[...] = jnp.zeros_like(acc_c_ref)

    xo_h = xo_h_ref[...].astype(jnp.bfloat16)
    xo_c = xo_c_ref[...].astype(jnp.bfloat16)
    if transpose_adj:
        # adj tiles are [K, M]; contract over their leading (src) axis so no
        # adj.T is ever materialized in HBM.
        dn = (((0,), (0,)), ((), ()))
        acc_h_ref[...] += jax.lax.dot_general(
            adj_h_ref[...], xo_h, dn, preferred_element_type=jnp.float32)
        acc_c_ref[...] += jax.lax.dot_general(
            adj_c_ref[...], xo_c, dn, preferred_element_type=jnp.float32)
    else:
        acc_h_ref[...] += jnp.dot(adj_h_ref[...], xo_h,
                                  preferred_element_type=jnp.float32)
        acc_c_ref[...] += jnp.dot(adj_c_ref[...], xo_c,
                                  preferred_element_type=jnp.float32)

    @pl.when(k == pl.num_programs(1) - 1)
    def _():
        td = td_ref[...]
        e = e_ref[...]
        agg_h = jnp.dot(acc_h_ref[...], w_h_ref[...],
                        preferred_element_type=jnp.float32)
        agg_c = jnp.dot(acc_c_ref[...], w_c_ref[...],
                        preferred_element_type=jnp.float32)
        dec_h = jnp.exp(-jnp.abs(lam_ref[0, 0]) * td)
        dec_c = jnp.exp(-jnp.abs(lam_ref[1, 0]) * td)
        out_h_ref[...] = jnp.tanh(dec_h * xs_h_ref[...] + agg_h + e)
        out_c_ref[...] = jnp.tanh(dec_c * xs_c_ref[...] + agg_c + e)


def _evolve_side(lam2, adj_h_p, adj_c_p, xo_h_p, xo_c_p, xs_h_p, xs_c_p,
                 td_p, e_p, w_h, w_c, tm, tk, transpose_adj):
    rows, d = xs_h_p.shape
    cols = xo_h_p.shape[0]
    grid = (rows // tm, cols // tk)
    if transpose_adj:
        adj_spec = pl.BlockSpec((tk, tm), lambda i, k: (k, i))
    else:
        adj_spec = pl.BlockSpec((tm, tk), lambda i, k: (i, k))
    out_spec = pl.BlockSpec((tm, d), lambda i, k: (i, 0))
    return pl.pallas_call(
        functools.partial(_evolve_kernel, transpose_adj=transpose_adj),
        out_shape=(jax.ShapeDtypeStruct((rows, d), jnp.float32),
                   jax.ShapeDtypeStruct((rows, d), jnp.float32)),
        grid_spec=pltpu.PrefetchScalarGridSpec(
            num_scalar_prefetch=0,
            grid=grid,
            in_specs=[
                pl.BlockSpec(memory_space=pltpu.MemorySpace.SMEM),  # lam (2,1)
                adj_spec,                                           # adj his
                adj_spec,                                           # adj ctx
                pl.BlockSpec((tk, d), lambda i, k: (k, 0)),         # x_other his
                pl.BlockSpec((tk, d), lambda i, k: (k, 0)),         # x_other ctx
                pl.BlockSpec((tm, d), lambda i, k: (i, 0)),         # x_self his
                pl.BlockSpec((tm, d), lambda i, k: (i, 0)),         # x_self ctx
                pl.BlockSpec((tm, 1), lambda i, k: (i, 0)),         # t_diff
                pl.BlockSpec((tm, d), lambda i, k: (i, 0)),         # static embed
                pl.BlockSpec((d, d), lambda i, k: (0, 0)),          # W his
                pl.BlockSpec((d, d), lambda i, k: (0, 0)),          # W ctx
            ],
            out_specs=[out_spec, out_spec],
            scratch_shapes=[pltpu.VMEM((tm, d), jnp.float32),
                            pltpu.VMEM((tm, d), jnp.float32)],
        ),
        compiler_params=_COMPILER_PARAMS,
    )(lam2, adj_h_p, adj_c_p, xo_h_p, xo_c_p, xs_h_p, xs_c_p, td_p, e_p,
      w_h, w_c)


# ----------------------------------------------------------------------------
# UpdateModule, his/ctx fused + residual add fused:
#   x_plus_cat = x_minus_cat + tanh((adj_tgt @ [x_his | x_ctx]) @ Wcat)
# with Wcat = block_diag(W_his, W_ctx)  ->  single streaming pass over adj_tgt
# and a single lane-dense 2d-wide output store.
# ----------------------------------------------------------------------------
def _update_kernel(adj_ref, xo_cat_ref, xs_cat_ref, wcat_ref, out_ref, acc_ref):
    k = pl.program_id(1)

    @pl.when(k == 0)
    def _():
        acc_ref[...] = jnp.zeros_like(acc_ref)

    acc_ref[...] += jnp.dot(adj_ref[...], xo_cat_ref[...].astype(jnp.bfloat16),
                            preferred_element_type=jnp.float32)

    @pl.when(k == pl.num_programs(1) - 1)
    def _():
        dx = jnp.tanh(jnp.dot(acc_ref[...], wcat_ref[...],
                              preferred_element_type=jnp.float32))
        out_ref[...] = xs_cat_ref[...] + dx


def _update_side(adj_p, xo_cat_p, xs_cat_p, wcat, tm, tk):
    rows = adj_p.shape[0]
    cols, d2 = xo_cat_p.shape
    grid = (rows // tm, cols // tk)
    return pl.pallas_call(
        _update_kernel,
        out_shape=jax.ShapeDtypeStruct((rows, d2), jnp.float32),
        grid_spec=pltpu.PrefetchScalarGridSpec(
            num_scalar_prefetch=0,
            grid=grid,
            in_specs=[
                pl.BlockSpec((tm, tk), lambda i, k: (i, k)),   # adj_tgt
                pl.BlockSpec((tk, d2), lambda i, k: (k, 0)),   # [x_his | x_ctx]
                pl.BlockSpec((tm, d2), lambda i, k: (i, 0)),   # residual input
                pl.BlockSpec((d2, d2), lambda i, k: (0, 0)),   # block-diag W
            ],
            out_specs=pl.BlockSpec((tm, d2), lambda i, k: (i, 0)),
            scratch_shapes=[pltpu.VMEM((tm, d2), jnp.float32)],
        ),
        compiler_params=_COMPILER_PARAMS,
    )(adj_p, xo_cat_p, xs_cat_p, wcat)


# ----------------------------------------------------------------------------
# Predictor (two-tower) + softmax loss, fused in VMEM.
# Pos/neg towers are stacked -> 2 matmuls instead of 4.
# ----------------------------------------------------------------------------
def _loss_kernel(zu_ref, zi_ref, wu_ref, wi_ref, loss_ref, *, b):
    hu = jnp.maximum(jnp.dot(zu_ref[...], wu_ref[...],
                             preferred_element_type=jnp.float32), 0.0)
    hi = jnp.maximum(jnp.dot(zi_ref[...], wi_ref[...],
                             preferred_element_type=jnp.float32), 0.0)
    hu_pos, hu_neg = hu[:b], hu[b:]
    hi_pos, hi_neg = hi[:b], hi[b:]

    pos = jnp.sum(hu_pos * hi_pos, axis=-1, keepdims=True)    # (B, 1)
    neg_u = jnp.sum(hu_pos * hi_neg, axis=-1, keepdims=True)
    neg_i = jnp.sum(hu_neg * hi_pos, axis=-1, keepdims=True)

    # loss = -mean(log_softmax([pos, neg_u, neg_i], dim=1)[:, 0])
    m = jnp.maximum(jnp.maximum(pos, neg_u), neg_i)
    lse = m + jnp.log(jnp.exp(pos - m) + jnp.exp(neg_u - m) + jnp.exp(neg_i - m))
    loss_ref[...] = jnp.full((1, 1), jnp.mean(lse - pos), jnp.float32)


def rec_loss(zu_pos, zi_pos, zu_neg, zi_neg, p):
    b = zu_pos.shape[0]
    zu_all = jnp.concatenate([zu_pos, zu_neg], axis=0)   # (2B, 2d)
    zi_all = jnp.concatenate([zi_pos, zi_neg], axis=0)   # (2B, 2d)
    out = pl.pallas_call(
        functools.partial(_loss_kernel, b=b),
        out_shape=jax.ShapeDtypeStruct((1, 1), jnp.float32),
        in_specs=[pl.BlockSpec(memory_space=pltpu.MemorySpace.VMEM)] * 4,
        out_specs=pl.BlockSpec(memory_space=pltpu.MemorySpace.VMEM),
    )(zu_all, zi_all, p["w_u"], p["w_i"])
    return out[0, 0]


# ----------------------------------------------------------------------------
# CPMR forward (glue in plain JAX: padding, gathers, hstack, slicing)
# ----------------------------------------------------------------------------
def cpmr_forward(params, batch, xu_in_his, xi_in_his, xu_in_ctx, xi_in_ctx):
    (t_diff, adj_his, adj_ctx, adj_tgt_i2u, adj_tgt_u2i,
     tgt_u, tgt_i, tgt_u_neg, tgt_i_neg) = batch

    eu = params["embeds_u"]
    ei = params["embeds_i"]
    n_user, d = eu.shape
    n_item = ei.shape[0]

    tile_u, pad_u = _pick_tile(n_user)
    tile_i, pad_i = _pick_tile(n_item)

    # Zero padding to tile multiples: padded adjacency rows/cols contribute
    # nothing, padded x/e/t rows produce tanh(0)=0 rows that are sliced off.
    tdu_p = _pad2(t_diff[:n_user], pad_u)
    tdi_p = _pad2(t_diff[n_user:], pad_i)
    eu_p = _pad2(eu, pad_u)
    ei_p = _pad2(ei, pad_i)
    adj_his_p = _pad2(adj_his, pad_u, pad_i).astype(jnp.bfloat16)
    adj_ctx_p = _pad2(adj_ctx, pad_u, pad_i).astype(jnp.bfloat16)
    adj_i2u_p = _pad2(adj_tgt_i2u, pad_u, pad_i).astype(jnp.bfloat16)
    adj_u2i_p = _pad2(adj_tgt_u2i, pad_i, pad_u).astype(jnp.bfloat16)

    xu_his_p = _pad2(xu_in_his, pad_u)
    xi_his_p = _pad2(xi_in_his, pad_i)
    xu_ctx_p = _pad2(xu_in_ctx, pad_u)
    xi_ctx_p = _pad2(xi_in_ctx, pad_i)

    p_his = params["evolver_his"]
    p_ctx = params["evolver_ctx"]
    lam2 = jnp.concatenate([p_his["lam"], p_ctx["lam"]], axis=0)  # (2,1) SMEM

    # Fused his+ctx evolution: one streaming pass per node side.
    xu_m_his_p, xu_m_ctx_p = _evolve_side(
        lam2, adj_his_p, adj_ctx_p, xi_his_p, xi_ctx_p, xu_his_p, xu_ctx_p,
        tdu_p, eu_p, p_his["w_i"], p_ctx["w_i"], tile_u, tile_i,
        transpose_adj=False)
    xi_m_his_p, xi_m_ctx_p = _evolve_side(
        lam2, adj_his_p, adj_ctx_p, xu_his_p, xu_ctx_p, xi_his_p, xi_ctx_p,
        tdi_p, ei_p, p_his["w_u"], p_ctx["w_u"], tile_i, tile_u,
        transpose_adj=True)

    xu_m_his = xu_m_his_p[:n_user]
    xu_m_ctx = xu_m_ctx_p[:n_user]
    xi_m_his = xi_m_his_p[:n_item]
    xi_m_ctx = xi_m_ctx_p[:n_item]

    zu_t = xu_m_his + xu_m_ctx
    zi_t = xi_m_his + xi_m_ctx
    zu_enc = jnp.concatenate([zu_t, eu], axis=1)   # torch.hstack
    zi_enc = jnp.concatenate([zi_t, ei], axis=1)

    zu_pos = jnp.take(zu_enc, tgt_u, axis=0)       # F.embedding
    zu_neg = jnp.take(zu_enc, tgt_u_neg, axis=0)
    zi_pos = jnp.take(zi_enc, tgt_i, axis=0)
    zi_neg = jnp.take(zi_enc, tgt_i_neg, axis=0)

    loss_rec = rec_loss(zu_pos, zi_pos, zu_neg, zi_neg, params["predictor"])

    # Fused his/ctx update + residual: one streaming pass per target adjacency.
    zero = jnp.zeros((d, d), jnp.float32)
    wu_cat = jnp.block([[params["updater_his"]["w_u"], zero],
                        [zero, params["updater_ctx"]["w_u"]]])   # (2d, 2d)
    wi_cat = jnp.block([[params["updater_his"]["w_i"], zero],
                        [zero, params["updater_ctx"]["w_i"]]])

    xi_cat_p = jnp.concatenate([xi_m_his_p, xi_m_ctx_p], axis=1)  # (pad_i, 2d)
    xu_cat_p = jnp.concatenate([xu_m_his_p, xu_m_ctx_p], axis=1)  # (pad_u, 2d)

    xu_plus_cat = _update_side(adj_i2u_p, xi_cat_p, xu_cat_p, wu_cat,
                               tile_u, tile_i)[:n_user]
    xi_plus_cat = _update_side(adj_u2i_p, xu_cat_p, xi_cat_p, wi_cat,
                               tile_i, tile_u)[:n_item]

    xu_t_plus_his = xu_plus_cat[:, :d]
    xi_t_plus_his = xi_plus_cat[:, :d]
    xu_t_plus_ctx = xu_plus_cat[:, d:]
    xi_t_plus_ctx = xi_plus_cat[:, d:]

    return (loss_rec, zu_pos, zi_enc,
            xu_t_plus_his, xi_t_plus_his, xu_t_plus_ctx, xi_t_plus_ctx)


# ----------------------------------------------------------------------------
# Deterministic parameter init (synthetic, no checkpoint load)
# ----------------------------------------------------------------------------
def init_params(key, n_user, n_item, d):
    ks = jax.random.split(key, 12)
    s = 0.1

    def nrm(k, shape):
        return (s * jax.random.normal(k, shape)).astype(jnp.float32)

    def evolver(k1, k2):
        return {"lam": jnp.full((1, 1), 0.5, jnp.float32),
                "w_u": nrm(k1, (d, d)), "w_i": nrm(k2, (d, d))}

    def updater(k1, k2):
        return {"w_u": nrm(k1, (d, d)), "w_i": nrm(k2, (d, d))}

    return {
        "embeds_u": nrm(ks[0], (n_user, d)),
        "embeds_i": nrm(ks[1], (n_item, d)),
        "evolver_his": evolver(ks[2], ks[3]),
        "evolver_ctx": evolver(ks[4], ks[5]),
        "updater_his": updater(ks[6], ks[7]),
        "updater_ctx": updater(ks[8], ks[9]),
        "predictor": {"w_u": nrm(ks[10], (2 * d, d)),
                      "w_i": nrm(ks[11], (2 * d, d))},
    }


def get_init_states(params):
    return (params["embeds_u"], params["embeds_i"],
            params["embeds_u"], params["embeds_i"])


# ----------------------------------------------------------------------------
# Demo
# ----------------------------------------------------------------------------
if __name__ == "__main__":
    n_user, n_item, d_latent, batch_size = 16, 32, 32, 8

    key = jax.random.PRNGKey(0)
    k_param, *kb = jax.random.split(key, 10)
    params = init_params(k_param, n_user, n_item, d_latent)

    def rand_adj(k, rows, cols, scale=0.25):
        return (jax.random.uniform(k, (rows, cols)) < scale).astype(jnp.float32)

    t_diff = jax.random.uniform(kb[0], (n_user + n_item, 1),
                                minval=0.0, maxval=2.0).astype(jnp.float32)
    adj_his = rand_adj(kb[1], n_user, n_item)
    adj_ctx = rand_adj(kb[2], n_user, n_item)
    adj_tgt_i2u = rand_adj(kb[3], n_user, n_item)
    adj_tgt_u2i = rand_adj(kb[4], n_item, n_user)
    tgt_u = jax.random.randint(kb[5], (batch_size,), 0, n_user, dtype=jnp.int32)
    tgt_i = jax.random.randint(kb[6], (batch_size,), 0, n_item, dtype=jnp.int32)
    tgt_u_neg = jax.random.randint(kb[7], (batch_size,), 0, n_user, dtype=jnp.int32)
    tgt_i_neg = jax.random.randint(kb[8], (batch_size,), 0, n_item, dtype=jnp.int32)

    batch = (t_diff, adj_his, adj_ctx, adj_tgt_i2u, adj_tgt_u2i,
             tgt_u, tgt_i, tgt_u_neg, tgt_i_neg)
    xu_in_his, xi_in_his, xu_in_ctx, xi_in_ctx = get_init_states(params)

    fwd = jax.jit(cpmr_forward)
    outs = fwd(params, batch, xu_in_his, xi_in_his, xu_in_ctx, xi_in_ctx)
    outs = jax.block_until_ready(outs)

    loss_rec, zu_pos, zi_enc, xu_p_his, xi_p_his, xu_p_ctx, xi_p_ctx = outs
    assert zu_pos.shape == (batch_size, 2 * d_latent)
    assert zi_enc.shape == (n_item, 2 * d_latent)
    assert xu_p_his.shape == (n_user, d_latent)
    assert xi_p_ctx.shape == (n_item, d_latent)
    assert bool(jnp.isfinite(loss_rec))

    print("KERNEL_OK")
</pallas_src>

<mosaic_0001>
module attributes {stable_mosaic.version = 11 : i64} {
  func.func @_evolve_kernel(%arg0: i32, %arg1: i32, %arg2: memref<2x1xf32, #tpu.memory_space<smem>>, %arg3: memref<16x32xbf16, #tpu.memory_space<vmem>>, %arg4: memref<16x32xbf16, #tpu.memory_space<vmem>>, %arg5: memref<32x32xf32, #tpu.memory_space<vmem>>, %arg6: memref<32x32xf32, #tpu.memory_space<vmem>>, %arg7: memref<16x32xf32, #tpu.memory_space<vmem>>, %arg8: memref<16x32xf32, #tpu.memory_space<vmem>>, %arg9: memref<16x1xf32, #tpu.memory_space<vmem>>, %arg10: memref<16x32xf32, #tpu.memory_space<vmem>>, %arg11: memref<32x32xf32, #tpu.memory_space<vmem>>, %arg12: memref<32x32xf32, #tpu.memory_space<vmem>>, %arg13: memref<16x32xf32, #tpu.memory_space<vmem>>, %arg14: memref<16x32xf32, #tpu.memory_space<vmem>>, %arg15: memref<16x32xf32, #tpu.memory_space<vmem>>, %arg16: memref<16x32xf32, #tpu.memory_space<vmem>>) attributes {dimension_semantics = [#tpu.dimension_semantics<parallel>, #tpu.dimension_semantics<arbitrary>], iteration_bounds = array<i64: 1, 1>, scalar_prefetch = 0 : i64, scratch_operands = 2 : i64, tpu.core_type = #tpu.core_type<tc>, window_params = [{transform_indices = @transform_0, window_bounds = array<i64: 2, 1>}, {transform_indices = @transform_1, window_bounds = array<i64: 16, 32>}, {transform_indices = @transform_2, window_bounds = array<i64: 16, 32>}, {transform_indices = @transform_3, window_bounds = array<i64: 32, 32>}, {transform_indices = @transform_4, window_bounds = array<i64: 32, 32>}, {transform_indices = @transform_5, window_bounds = array<i64: 16, 32>}, {transform_indices = @transform_6, window_bounds = array<i64: 16, 32>}, {transform_indices = @transform_7, window_bounds = array<i64: 16, 1>}, {transform_indices = @transform_8, window_bounds = array<i64: 16, 32>}, {pipeline_mode = #tpu.pipeline_mode<synchronous>, transform_indices = @transform_9, window_bounds = array<i64: 32, 32>}, {pipeline_mode = #tpu.pipeline_mode<synchronous>, transform_indices = @transform_10, window_bounds = array<i64: 32, 32>}, {transform_indices = @transform_11, window_bounds = array<i64: 16, 32>}, {transform_indices = @transform_12, window_bounds = array<i64: 16, 32>}]} {
    %c0_i32 = arith.constant 0 : i32
    %0 = arith.cmpi eq, %arg1, %c0_i32 : i32
    %1 = arith.extui %0 : i1 to i32
    %c0_i32_0 = arith.constant 0 : i32
    %2 = arith.cmpi ne, %1, %c0_i32_0 : i32
    scf.if %2 {
      %cst_19 = arith.constant 0.000000e+00 : f32
      %20 = vector.broadcast %cst_19 : f32 to vector<16x32xf32>
      %c0_20 = arith.constant 0 : index
      %c0_21 = arith.constant 0 : index
      %21 = vector.load %arg15[%c0_20, %c0_21] : memref<16x32xf32, #tpu.memory_space<vmem>>, vector<16x32xf32>
      tpu.vector_store %arg15[%c0_20, %c0_21], %20 {strides = array<i32>} : memref<16x32xf32, #tpu.memory_space<vmem>>, vector<16x32xf32>,
      %cst_22 = arith.constant 0.000000e+00 : f32
      %22 = vector.broadcast %cst_22 : f32 to vector<16x32xf32>
      %c0_23 = arith.constant 0 : index
      %c0_24 = arith.constant 0 : index
      %23 = vector.load %arg16[%c0_23, %c0_24] : memref<16x32xf32, #tpu.memory_space<vmem>>, vector<16x32xf32>
      tpu.vector_store %arg16[%c0_23, %c0_24], %22 {strides = array<i32>} : memref<16x32xf32, #tpu.memory_space<vmem>>, vector<16x32xf32>,
    } else {
    }
    %c0 = arith.constant 0 : index
    %c0_1 = arith.constant 0 : index
    %3 = vector.load %arg5[%c0, %c0_1] : memref<32x32xf32, #tpu.memory_space<vmem>>, vector<32x32xf32>
    %4 = arith.truncf %3 : vector<32x32xf32> to vector<32x32xbf16>
    %c0_2 = arith.constant 0 : index
    %c0_3 = arith.constant 0 : index
    %5 = vector.load %arg6[%c0_2, %c0_3] : memref<32x32xf32, #tpu.memory_space<vmem>>, vector<32x32xf32>
    %6 = arith.truncf %5 : vector<32x32xf32> to vector<32x32xbf16>
    %c0_4 = arith.constant 0 : index
    %c0_5 = arith.constant 0 : index
    %7 = vector.load %arg15[%c0_4, %c0_5] : memref<16x32xf32, #tpu.memory_space<vmem>>, vector<16x32xf32>
    %c0_6 = arith.constant 0 : index
    %c0_7 = arith.constant 0 : index
    %8 = vector.load %arg3[%c0_6, %c0_7] : memref<16x32xbf16, #tpu.memory_space<vmem>>, vector<16x32xbf16>
    %cst = arith.constant dense<0.000000e+00> : vector<16x32xf32>
    %9 = tpu.matmul %8, %4, %cst {dimension_numbers = #tpu.dot_dimension_numbers<[1], [0], [0], [1], [0, 0, 1, 1], [], []>} : vector<16x32xbf16>, vector<32x32xbf16>, vector<16x32xf32> -> vector<16x32xf32>
    %10 = arith.addf %7, %9 : vector<16x32xf32>
    %c0_8 = arith.constant 0 : index
    %c0_9 = arith.constant 0 : index
    %11 = vector.load %arg15[%c0_8, %c0_9] : memref<16x32xf32, #tpu.memory_space<vmem>>, vector<16x32xf32>
    tpu.vector_store %arg15[%c0_8, %c0_9], %10 {strides = array<i32>} : memref<16x32xf32, #tpu.memory_space<vmem>>, vector<16x32xf32>,
    %c0_10 = arith.constant 0 : index
    %c0_11 = arith.constant 0 : index
    %12 = vector.load %arg16[%c0_10, %c0_11] : memref<16x32xf32, #tpu.memory_space<vmem>>, vector<16x32xf32>
    %c0_12 = arith.constant 0 : index
    %c0_13 = arith.constant 0 : index
    %13 = vector.load %arg4[%c0_12, %c0_13] : memref<16x32xbf16, #tpu.memory_space<vmem>>, vector<16x32xbf16>
    %cst_14 = arith.constant dense<0.000000e+00> : vector<16x32xf32>
    %14 = tpu.matmul %13, %6, %cst_14 {dimension_numbers = #tpu.dot_dimension_numbers<[1], [0], [0], [1], [0, 0, 1, 1], [], []>} : vector<16x32xbf16>, vector<32x32xbf16>, vector<16x32xf32> -> vector<16x32xf32>
    %15 = arith.addf %12, %14 : vector<16x32xf32>
    %c0_15 = arith.constant 0 : index
    %c0_16 = arith.constant 0 : index
    %16 = vector.load %arg16[%c0_15, %c0_16] : memref<16x32xf32, #tpu.memory_space<vmem>>, vector<16x32xf32>
    tpu.vector_store %arg16[%c0_15, %c0_16], %15 {strides = array<i32>} : memref<16x32xf32, #tpu.memory_space<vmem>>, vector<16x32xf32>,
    %c0_i32_17 = arith.constant 0 : i32
    %17 = arith.cmpi eq, %arg1, %c0_i32_17 : i32
    %18 = arith.extui %17 : i1 to i32
    %c0_i32_18 = arith.constant 0 : i32
    %19 = arith.cmpi ne, %18, %c0_i32_18 : i32
    scf.if %19 {
      %c0_19 = arith.constant 0 : index
      %c0_20 = arith.constant 0 : index
      %20 = vector.load %arg9[%c0_19, %c0_20] : memref<16x1xf32, #tpu.memory_space<vmem>>, vector<16x1xf32>
      %c0_21 = arith.constant 0 : index
      %c0_22 = arith.constant 0 : index
      %21 = vector.load %arg10[%c0_21, %c0_22] : memref<16x32xf32, #tpu.memory_space<vmem>>, vector<16x32xf32>
      %c0_23 = arith.constant 0 : index
      %c0_24 = arith.constant 0 : index
      %22 = vector.load %arg15[%c0_23, %c0_24] : memref<16x32xf32, #tpu.memory_space<vmem>>, vector<16x32xf32>
      %c0_25 = arith.constant 0 : index
      %c0_26 = arith.constant 0 : index
      %23 = vector.load %arg11[%c0_25, %c0_26] : memref<32x32xf32, #tpu.memory_space<vmem>>, vector<32x32xf32>
      %cst_27 = arith.constant dense<0.000000e+00> : vector<16x32xf32>
      %24 = tpu.matmul %22, %23, %cst_27 {dimension_numbers = #tpu.dot_dimension_numbers<[1], [0], [0], [1], [0, 0, 1, 1], [], []>} : vector<16x32xf32>, vector<32x32xf32>, vector<16x32xf32> -> vector<16x32xf32>
      %c0_28 = arith.constant 0 : index
      %c0_29 = arith.constant 0 : index
      %25 = vector.load %arg16[%c0_28, %c0_29] : memref<16x32xf32, #tpu.memory_space<vmem>>, vector<16x32xf32>
      %c0_30 = arith.constant 0 : index
      %c0_31 = arith.constant 0 : index
      %26 = vector.load %arg12[%c0_30, %c0_31] : memref<32x32xf32, #tpu.memory_space<vmem>>, vector<32x32xf32>
      %cst_32 = arith.constant dense<0.000000e+00> : vector<16x32xf32>
      %27 = tpu.matmul %25, %26, %cst_32 {dimension_numbers = #tpu.dot_dimension_numbers<[1], [0], [0], [1], [0, 0, 1, 1], [], []>} : vector<16x32xf32>, vector<32x32xf32>, vector<16x32xf32> -> vector<16x32xf32>
      %c0_33 = arith.constant 0 : index
      %c0_34 = arith.constant 0 : index
      %28 = memref.load %arg2[%c0_33, %c0_34] : memref<2x1xf32, #tpu.memory_space<smem>>
      %29 = math.absf %28 : f32
      %cst_35 = arith.constant 0.000000e+00 : f32
      %30 = arith.subf %cst_35, %29 : f32
      %31 = vector.broadcast %30 : f32 to vector<16x1xf32>
      %32 = arith.mulf %31, %20 : vector<16x1xf32>
      %33 = math.exp %32 : vector<16x1xf32>
      %c1 = arith.constant 1 : index
      %c0_36 = arith.constant 0 : index
      %34 = memref.load %arg2[%c1, %c0_36] : memref<2x1xf32, #tpu.memory_space<smem>>
      %35 = math.absf %34 : f32
      %cst_37 = arith.constant 0.000000e+00 : f32
      %36 = arith.subf %cst_37, %35 : f32
      %37 = vector.broadcast %36 : f32 to vector<16x1xf32>
      %38 = arith.mulf %37, %20 : vector<16x1xf32>
      %39 = math.exp %38 : vector<16x1xf32>
      %c0_38 = arith.constant 0 : index
      %c0_39 = arith.constant 0 : index
      %40 = vector.load %arg7[%c0_38, %c0_39] : memref<16x32xf32, #tpu.memory_space<vmem>>, vector<16x32xf32>
      %41 = vector.broadcast %33 : vector<16x1xf32> to vector<16x32xf32>
      %42 = arith.mulf %41, %40 : vector<16x32xf32>
      %43 = arith.addf %42, %24 : vector<16x32xf32>
      %44 = arith.addf %43, %21 : vector<16x32xf32>
      %45 = math.tanh %44 : vector<16x32xf32>
      %c0_40 = arith.constant 0 : index
      %c0_41 = arith.constant 0 : index
      %46 = vector.load %arg13[%c0_40, %c0_41] : memref<16x32xf32, #tpu.memory_space<vmem>>, vector<16x32xf32>
      tpu.vector_store %arg13[%c0_40, %c0_41], %45 {strides = array<i32>} : memref<16x32xf32, #tpu.memory_space<vmem>>, vector<16x32xf32>,
      %c0_42 = arith.constant 0 : index
      %c0_43 = arith.constant 0 : index
      %47 = vector.load %arg8[%c0_42, %c0_43] : memref<16x32xf32, #tpu.memory_space<vmem>>, vector<16x32xf32>
      %48 = vector.broadcast %39 : vector<16x1xf32> to vector<16x32xf32>
      %49 = arith.mulf %48, %47 : vector<16x32xf32>
      %50 = arith.addf %49, %27 : vector<16x32xf32>
      %51 = arith.addf %50, %21 : vector<16x32xf32>
      %52 = math.tanh %51 : vector<16x32xf32>
      %c0_44 = arith.constant 0 : index
      %c0_45 = arith.constant 0 : index
      %53 = vector.load %arg14[%c0_44, %c0_45] : memref<16x32xf32, #tpu.memory_space<vmem>>, vector<16x32xf32>
      tpu.vector_store %arg14[%c0_44, %c0_45], %52 {strides = array<i32>} : memref<16x32xf32, #tpu.memory_space<vmem>>, vector<16x32xf32>,
    } else {
    }
    return
  }
  func.func @transform_0(%arg0: i32, %arg1: i32) -> (i32, i32) {
    %c0_i32 = arith.constant 0 : i32
    %c0_i32_0 = arith.constant 0 : i32
    %c0_i32_1 = arith.constant 0 : i32
    return %c0_i32, %c0_i32_0 : i32, i32
  }
  func.func @transform_1(%arg0: i32, %arg1: i32) -> (i32, i32) {
    %c0_i32 = arith.constant 0 : i32
    return %arg0, %arg1 : i32, i32
  }
  func.func @transform_2(%arg0: i32, %arg1: i32) -> (i32, i32) {
    %c0_i32 = arith.constant 0 : i32
    return %arg0, %arg1 : i32, i32
  }
  func.func @transform_3(%arg0: i32, %arg1: i32) -> (i32, i32) {
    %c0_i32 = arith.constant 0 : i32
    %c0_i32_0 = arith.constant 0 : i32
    return %arg1, %c0_i32 : i32, i32
  }
  func.func @transform_4(%arg0: i32, %arg1: i32) -> (i32, i32) {
    %c0_i32 = arith.constant 0 : i32
    %c0_i32_0 = arith.constant 0 : i32
    return %arg1, %c0_i32 : i32, i32
  }
  func.func @transform_5(%arg0: i32, %arg1: i32) -> (i32, i32) {
    %c0_i32 = arith.constant 0 : i32
    %c0_i32_0 = arith.constant 0 : i32
    return %arg0, %c0_i32 : i32, i32
  }
  func.func @transform_6(%arg0: i32, %arg1: i32) -> (i32, i32) {
    %c0_i32 = arith.constant 0 : i32
    %c0_i32_0 = arith.constant 0 : i32
    return %arg0, %c0_i32 : i32, i32
  }
  func.func @transform_7(%arg0: i32, %arg1: i32) -> (i32, i32) {
    %c0_i32 = arith.constant 0 : i32
    %c0_i32_0 = arith.constant 0 : i32
    return %arg0, %c0_i32 : i32, i32
  }
  func.func @transform_8(%arg0: i32, %arg1: i32) -> (i32, i32) {
    %c0_i32 = arith.constant 0 : i32
    %c0_i32_0 = arith.constant 0 : i32
    return %arg0, %c0_i32 : i32, i32
  }
  func.func @transform_9(%arg0: i32, %arg1: i32) -> (i32, i32) {
    %c0_i32 = arith.constant 0 : i32
    %c0_i32_0 = arith.constant 0 : i32
    %c0_i32_1 = arith.constant 0 : i32
    return %c0_i32, %c0_i32_0 : i32, i32
  }
  func.func @transform_10(%arg0: i32, %arg1: i32) -> (i32, i32) {
    %c0_i32 = arith.constant 0 : i32
    %c0_i32_0 = arith.constant 0 : i32
    %c0_i32_1 = arith.constant 0 : i32
    return %c0_i32, %c0_i32_0 : i32, i32
  }
  func.func @transform_11(%arg0: i32, %arg1: i32) -> (i32, i32) {
    %c0_i32 = arith.constant 0 : i32
    %c0_i32_0 = arith.constant 0 : i32
    return %arg0, %c0_i32 : i32, i32
  }
  func.func @transform_12(%arg0: i32, %arg1: i32) -> (i32, i32) {
    %c0_i32 = arith.constant 0 : i32
    %c0_i32_0 = arith.constant 0 : i32
    return %arg0, %c0_i32 : i32, i32
  }
}

module attributes {stable_mosaic.version = 11 : i64} {
  func.func @_evolve_kernel(%arg0: i32, %arg1: i32, %arg2: memref<2x1xf32, #tpu.memory_space<smem>>, %arg3: memref<16x32xbf16, #tpu.memory_space<vmem>>, %arg4: memref<16x32xbf16, #tpu.memory_space<vmem>>, %arg5: memref<16x32xf32, #tpu.memory_space<vmem>>, %arg6: memref<16x32xf32, #tpu.memory_space<vmem>>, %arg7: memref<32x32xf32, #tpu.memory_space<vmem>>, %arg8: memref<32x32xf32, #tpu.memory_space<vmem>>, %arg9: memref<32x1xf32, #tpu.memory_space<vmem>>, %arg10: memref<32x32xf32, #tpu.memory_space<vmem>>, %arg11: memref<32x32xf32, #tpu.memory_space<vmem>>, %arg12: memref<32x32xf32, #tpu.memory_space<vmem>>, %arg13: memref<32x32xf32, #tpu.memory_space<vmem>>, %arg14: memref<32x32xf32, #tpu.memory_space<vmem>>, %arg15: memref<32x32xf32, #tpu.memory_space<vmem>>, %arg16: memref<32x32xf32, #tpu.memory_space<vmem>>) attributes {dimension_semantics = [#tpu.dimension_semantics<parallel>, #tpu.dimension_semantics<arbitrary>], iteration_bounds = array<i64: 1, 1>, scalar_prefetch = 0 : i64, scratch_operands = 2 : i64, tpu.core_type = #tpu.core_type<tc>, window_params = [{transform_indices = @transform_0, window_bounds = array<i64: 2, 1>}, {transform_indices = @transform_1, window_bounds = array<i64: 16, 32>}, {transform_indices = @transform_2, window_bounds = array<i64: 16, 32>}, {transform_indices = @transform_3, window_bounds = array<i64: 16, 32>}, {transform_indices = @transform_4, window_bounds = array<i64: 16, 32>}, {transform_indices = @transform_5, window_bounds = array<i64: 32, 32>}, {transform_indices = @transform_6, window_bounds = array<i64: 32, 32>}, {transform_indices = @transform_7, window_bounds = array<i64: 32, 1>}, {transform_indices = @transform_8, window_bounds = array<i64: 32, 32>}, {pipeline_mode = #tpu.pipeline_mode<synchronous>, transform_indices = @transform_9, window_bounds = array<i64: 32, 32>}, {pipeline_mode = #tpu.pipeline_mode<synchronous>, transform_indices = @transform_10, window_bounds = array<i64: 32, 32>}, {transform_indices = @transform_11, window_bounds = array<i64: 32, 32>}, {transform_indices = @transform_12, window_bounds = array<i64: 32, 32>}]} {
    %c0_i32 = arith.constant 0 : i32
    %0 = arith.cmpi eq, %arg1, %c0_i32 : i32
    %1 = arith.extui %0 : i1 to i32
    %c0_i32_0 = arith.constant 0 : i32
    %2 = arith.cmpi ne, %1, %c0_i32_0 : i32
    scf.if %2 {
      %cst_19 = arith.constant 0.000000e+00 : f32
      %20 = vector.broadcast %cst_19 : f32 to vector<32x32xf32>
      %c0_20 = arith.constant 0 : index
      %c0_21 = arith.constant 0 : index
      %21 = vector.load %arg15[%c0_20, %c0_21] : memref<32x32xf32, #tpu.memory_space<vmem>>, vector<32x32xf32>
      tpu.vector_store %arg15[%c0_20, %c0_21], %20 {strides = array<i32>} : memref<32x32xf32, #tpu.memory_space<vmem>>, vector<32x32xf32>,
      %cst_22 = arith.constant 0.000000e+00 : f32
      %22 = vector.broadcast %cst_22 : f32 to vector<32x32xf32>
      %c0_23 = arith.constant 0 : index
      %c0_24 = arith.constant 0 : index
      %23 = vector.load %arg16[%c0_23, %c0_24] : memref<32x32xf32, #tpu.memory_space<vmem>>, vector<32x32xf32>
      tpu.vector_store %arg16[%c0_23, %c0_24], %22 {strides = array<i32>} : memref<32x32xf32, #tpu.memory_space<vmem>>, vector<32x32xf32>,
    } else {
    }
    %c0 = arith.constant 0 : index
    %c0_1 = arith.constant 0 : index
    %3 = vector.load %arg5[%c0, %c0_1] : memref<16x32xf32, #tpu.memory_space<vmem>>, vector<16x32xf32>
    %4 = arith.truncf %3 : vector<16x32xf32> to vector<16x32xbf16>
    %c0_2 = arith.constant 0 : index
    %c0_3 = arith.constant 0 : index
    %5 = vector.load %arg6[%c0_2, %c0_3] : memref<16x32xf32, #tpu.memory_space<vmem>>, vector<16x32xf32>
    %6 = arith.truncf %5 : vector<16x32xf32> to vector<16x32xbf16>
    %c0_4 = arith.constant 0 : index
    %c0_5 = arith.constant 0 : index
    %7 = vector.load %arg15[%c0_4, %c0_5] : memref<32x32xf32, #tpu.memory_space<vmem>>, vector<32x32xf32>
    %c0_6 = arith.constant 0 : index
    %c0_7 = arith.constant 0 : index
    %8 = vector.load %arg3[%c0_6, %c0_7] : memref<16x32xbf16, #tpu.memory_space<vmem>>, vector<16x32xbf16>
    %cst = arith.constant dense<0.000000e+00> : vector<32x32xf32>
    %9 = tpu.matmul %8, %4, %cst {dimension_numbers = #tpu.dot_dimension_numbers<[0], [0], [1], [1], [0, 1, 1, 1], [], []>} : vector<16x32xbf16>, vector<16x32xbf16>, vector<32x32xf32> -> vector<32x32xf32>
    %10 = arith.addf %7, %9 : vector<32x32xf32>
    %c0_8 = arith.constant 0 : index
    %c0_9 = arith.constant 0 : index
    %11 = vector.load %arg15[%c0_8, %c0_9] : memref<32x32xf32, #tpu.memory_space<vmem>>, vector<32x32xf32>
    tpu.vector_store %arg15[%c0_8, %c0_9], %10 {strides = array<i32>} : memref<32x32xf32, #tpu.memory_space<vmem>>, vector<32x32xf32>,
    %c0_10 = arith.constant 0 : index
    %c0_11 = arith.constant 0 : index
    %12 = vector.load %arg16[%c0_10, %c0_11] : memref<32x32xf32, #tpu.memory_space<vmem>>, vector<32x32xf32>
    %c0_12 = arith.constant 0 : index
    %c0_13 = arith.constant 0 : index
    %13 = vector.load %arg4[%c0_12, %c0_13] : memref<16x32xbf16, #tpu.memory_space<vmem>>, vector<16x32xbf16>
    %cst_14 = arith.constant dense<0.000000e+00> : vector<32x32xf32>
    %14 = tpu.matmul %13, %6, %cst_14 {dimension_numbers = #tpu.dot_dimension_numbers<[0], [0], [1], [1], [0, 1, 1, 1], [], []>} : vector<16x32xbf16>, vector<16x32xbf16>, vector<32x32xf32> -> vector<32x32xf32>
    %15 = arith.addf %12, %14 : vector<32x32xf32>
    %c0_15 = arith.constant 0 : index
    %c0_16 = arith.constant 0 : index
    %16 = vector.load %arg16[%c0_15, %c0_16] : memref<32x32xf32, #tpu.memory_space<vmem>>, vector<32x32xf32>
    tpu.vector_store %arg16[%c0_15, %c0_16], %15 {strides = array<i32>} : memref<32x32xf32, #tpu.memory_space<vmem>>, vector<32x32xf32>,
    %c0_i32_17 = arith.constant 0 : i32
    %17 = arith.cmpi eq, %arg1, %c0_i32_17 : i32
    %18 = arith.extui %17 : i1 to i32
    %c0_i32_18 = arith.constant 0 : i32
    %19 = arith.cmpi ne, %18, %c0_i32_18 : i32
    scf.if %19 {
      %c0_19 = arith.constant 0 : index
      %c0_20 = arith.constant 0 : index
      %20 = vector.load %arg9[%c0_19, %c0_20] : memref<32x1xf32, #tpu.memory_space<vmem>>, vector<32x1xf32>
      %c0_21 = arith.constant 0 : index
      %c0_22 = arith.constant 0 : index
      %21 = vector.load %arg10[%c0_21, %c0_22] : memref<32x32xf32, #tpu.memory_space<vmem>>, vector<32x32xf32>
      %c0_23 = arith.constant 0 : index
      %c0_24 = arith.constant 0 : index
      %22 = vector.load %arg15[%c0_23, %c0_24] : memref<32x32xf32, #tpu.memory_space<vmem>>, vector<32x32xf32>
      %c0_25 = arith.constant 0 : index
      %c0_26 = arith.constant 0 : index
      %23 = vector.load %arg11[%c0_25, %c0_26] : memref<32x32xf32, #tpu.memory_space<vmem>>, vector<32x32xf32>
      %cst_27 = arith.constant dense<0.000000e+00> : vector<32x32xf32>
      %24 = tpu.matmul %22, %23, %cst_27 {dimension_numbers = #tpu.dot_dimension_numbers<[1], [0], [0], [1], [0, 0, 1, 1], [], []>} : vector<32x32xf32>, vector<32x32xf32>, vector<32x32xf32> -> vector<32x32xf32>
      %c0_28 = arith.constant 0 : index
      %c0_29 = arith.constant 0 : index
      %25 = vector.load %arg16[%c0_28, %c0_29] : memref<32x32xf32, #tpu.memory_space<vmem>>, vector<32x32xf32>
      %c0_30 = arith.constant 0 : index
      %c0_31 = arith.constant 0 : index
      %26 = vector.load %arg12[%c0_30, %c0_31] : memref<32x32xf32, #tpu.memory_space<vmem>>, vector<32x32xf32>
      %cst_32 = arith.constant dense<0.000000e+00> : vector<32x32xf32>
      %27 = tpu.matmul %25, %26, %cst_32 {dimension_numbers = #tpu.dot_dimension_numbers<[1], [0], [0], [1], [0, 0, 1, 1], [], []>} : vector<32x32xf32>, vector<32x32xf32>, vector<32x32xf32> -> vector<32x32xf32>
      %c0_33 = arith.constant 0 : index
      %c0_34 = arith.constant 0 : index
      %28 = memref.load %arg2[%c0_33, %c0_34] : memref<2x1xf32, #tpu.memory_space<smem>>
      %29 = math.absf %28 : f32
      %cst_35 = arith.constant 0.000000e+00 : f32
      %30 = arith.subf %cst_35, %29 : f32
      %31 = vector.broadcast %30 : f32 to vector<32x1xf32>
      %32 = arith.mulf %31, %20 : vector<32x1xf32>
      %33 = math.exp %32 : vector<32x1xf32>
      %c1 = arith.constant 1 : index
      %c0_36 = arith.constant 0 : index
      %34 = memref.load %arg2[%c1, %c0_36] : memref<2x1xf32, #tpu.memory_space<smem>>
      %35 = math.absf %34 : f32
      %cst_37 = arith.constant 0.000000e+00 : f32
      %36 = arith.subf %cst_37, %35 : f32
      %37 = vector.broadcast %36 : f32 to vector<32x1xf32>
      %38 = arith.mulf %37, %20 : vector<32x1xf32>
      %39 = math.exp %38 : vector<32x1xf32>
      %c0_38 = arith.constant 0 : index
      %c0_39 = arith.constant 0 : index
      %40 = vector.load %arg7[%c0_38, %c0_39] : memref<32x32xf32, #tpu.memory_space<vmem>>, vector<32x32xf32>
      %41 = vector.broadcast %33 : vector<32x1xf32> to vector<32x32xf32>
      %42 = arith.mulf %41, %40 : vector<32x32xf32>
      %43 = arith.addf %42, %24 : vector<32x32xf32>
      %44 = arith.addf %43, %21 : vector<32x32xf32>
      %45 = math.tanh %44 : vector<32x32xf32>
      %c0_40 = arith.constant 0 : index
      %c0_41 = arith.constant 0 : index
      %46 = vector.load %arg13[%c0_40, %c0_41] : memref<32x32xf32, #tpu.memory_space<vmem>>, vector<32x32xf32>
      tpu.vector_store %arg13[%c0_40, %c0_41], %45 {strides = array<i32>} : memref<32x32xf32, #tpu.memory_space<vmem>>, vector<32x32xf32>,
      %c0_42 = arith.constant 0 : index
      %c0_43 = arith.constant 0 : index
      %47 = vector.load %arg8[%c0_42, %c0_43] : memref<32x32xf32, #tpu.memory_space<vmem>>, vector<32x32xf32>
      %48 = vector.broadcast %39 : vector<32x1xf32> to vector<32x32xf32>
      %49 = arith.mulf %48, %47 : vector<32x32xf32>
      %50 = arith.addf %49, %27 : vector<32x32xf32>
      %51 = arith.addf %50, %21 : vector<32x32xf32>
      %52 = math.tanh %51 : vector<32x32xf32>
      %c0_44 = arith.constant 0 : index
      %c0_45 = arith.constant 0 : index
      %53 = vector.load %arg14[%c0_44, %c0_45] : memref<32x32xf32, #tpu.memory_space<vmem>>, vector<32x32xf32>
      tpu.vector_store %arg14[%c0_44, %c0_45], %52 {strides = array<i32>} : memref<32x32xf32, #tpu.memory_space<vmem>>, vector<32x32xf32>,
    } else {
    }
    return
  }
  func.func @transform_0(%arg0: i32, %arg1: i32) -> (i32, i32) {
    %c0_i32 = arith.constant 0 : i32
    %c0_i32_0 = arith.constant 0 : i32
    %c0_i32_1 = arith.constant 0 : i32
    return %c0_i32, %c0_i32_0 : i32, i32
  }
  func.func @transform_1(%arg0: i32, %arg1: i32) -> (i32, i32) {
    %c0_i32 = arith.constant 0 : i32
    return %arg1, %arg0 : i32, i32
  }
  func.func @transform_2(%arg0: i32, %arg1: i32) -> (i32, i32) {
    %c0_i32 = arith.constant 0 : i32
    return %arg1, %arg0 : i32, i32
  }
  func.func @transform_3(%arg0: i32, %arg1: i32) -> (i32, i32) {
    %c0_i32 = arith.constant 0 : i32
    %c0_i32_0 = arith.constant 0 : i32
    return %arg1, %c0_i32 : i32, i32
  }
  func.func @transform_4(%arg0: i32, %arg1: i32) -> (i32, i32) {
    %c0_i32 = arith.constant 0 : i32
    %c0_i32_0 = arith.constant 0 : i32
    return %arg1, %c0_i32 : i32, i32
  }
  func.func @transform_5(%arg0: i32, %arg1: i32) -> (i32, i32) {
    %c0_i32 = arith.constant 0 : i32
    %c0_i32_0 = arith.constant 0 : i32
    return %arg0, %c0_i32 : i32, i32
  }
  func.func @transform_6(%arg0: i32, %arg1: i32) -> (i32, i32) {
    %c0_i32 = arith.constant 0 : i32
    %c0_i32_0 = arith.constant 0 : i32
    return %arg0, %c0_i32 : i32, i32
  }
  func.func @transform_7(%arg0: i32, %arg1: i32) -> (i32, i32) {
    %c0_i32 = arith.constant 0 : i32
    %c0_i32_0 = arith.constant 0 : i32
    return %arg0, %c0_i32 : i32, i32
  }
  func.func @transform_8(%arg0: i32, %arg1: i32) -> (i32, i32) {
    %c0_i32 = arith.constant 0 : i32
    %c0_i32_0 = arith.constant 0 : i32
    return %arg0, %c0_i32 : i32, i32
  }
  func.func @transform_9(%arg0: i32, %arg1: i32) -> (i32, i32) {
    %c0_i32 = arith.constant 0 : i32
    %c0_i32_0 = arith.constant 0 : i32
    %c0_i32_1 = arith.constant 0 : i32
    return %c0_i32, %c0_i32_0 : i32, i32
  }
  func.func @transform_10(%arg0: i32, %arg1: i32) -> (i32, i32) {
    %c0_i32 = arith.constant 0 : i32
    %c0_i32_0 = arith.constant 0 : i32
    %c0_i32_1 = arith.constant 0 : i32
    return %c0_i32, %c0_i32_0 : i32, i32
  }
  func.func @transform_11(%arg0: i32, %arg1: i32) -> (i32, i32) {
    %c0_i32 = arith.constant 0 : i32
    %c0_i32_0 = arith.constant 0 : i32
    return %arg0, %c0_i32 : i32, i32
  }
  func.func @transform_12(%arg0: i32, %arg1: i32) -> (i32, i32) {
    %c0_i32 = arith.constant 0 : i32
    %c0_i32_0 = arith.constant 0 : i32
    return %arg0, %c0_i32 : i32, i32
  }
}

module attributes {stable_mosaic.version = 11 : i64} {
  func.func @_loss_kernel(%arg0: memref<16x64xf32, #tpu.memory_space<vmem>>, %arg1: memref<16x64xf32, #tpu.memory_space<vmem>>, %arg2: memref<64x32xf32, #tpu.memory_space<vmem>>, %arg3: memref<64x32xf32, #tpu.memory_space<vmem>>, %arg4: memref<1x1xf32, #tpu.memory_space<vmem>>) attributes {dimension_semantics = [], scalar_prefetch = 0 : i64, scratch_operands = 0 : i64, tpu.core_type = #tpu.core_type<tc>} {
    %c0 = arith.constant 0 : index
    %c0_0 = arith.constant 0 : index
    %0 = vector.load %arg0[%c0, %c0_0] : memref<16x64xf32, #tpu.memory_space<vmem>>, vector<16x64xf32>
    %c0_1 = arith.constant 0 : index
    %c0_2 = arith.constant 0 : index
    %1 = vector.load %arg2[%c0_1, %c0_2] : memref<64x32xf32, #tpu.memory_space<vmem>>, vector<64x32xf32>
    %cst = arith.constant dense<0.000000e+00> : vector<16x32xf32>
    %2 = tpu.matmul %0, %1, %cst {dimension_numbers = #tpu.dot_dimension_numbers<[1], [0], [0], [1], [0, 0, 1, 1], [], []>} : vector<16x64xf32>, vector<64x32xf32>, vector<16x32xf32> -> vector<16x32xf32>
    %cst_3 = arith.constant 0.000000e+00 : f32
    %3 = vector.broadcast %cst_3 : f32 to vector<16x32xf32>
    %4 = arith.maximumf %2, %3 : vector<16x32xf32>
    %c0_4 = arith.constant 0 : index
    %c0_5 = arith.constant 0 : index
    %5 = vector.load %arg1[%c0_4, %c0_5] : memref<16x64xf32, #tpu.memory_space<vmem>>, vector<16x64xf32>
    %c0_6 = arith.constant 0 : index
    %c0_7 = arith.constant 0 : index
    %6 = vector.load %arg3[%c0_6, %c0_7] : memref<64x32xf32, #tpu.memory_space<vmem>>, vector<64x32xf32>
    %cst_8 = arith.constant dense<0.000000e+00> : vector<16x32xf32>
    %7 = tpu.matmul %5, %6, %cst_8 {dimension_numbers = #tpu.dot_dimension_numbers<[1], [0], [0], [1], [0, 0, 1, 1], [], []>} : vector<16x64xf32>, vector<64x32xf32>, vector<16x32xf32> -> vector<16x32xf32>
    %cst_9 = arith.constant 0.000000e+00 : f32
    %8 = vector.broadcast %cst_9 : f32 to vector<16x32xf32>
    %9 = arith.maximumf %7, %8 : vector<16x32xf32>
    %10 = vector.extract_strided_slice %4 {offsets = [0, 0], sizes = [8, 32], strides = [1, 1]} : vector<16x32xf32> to vector<8x32xf32>
    %11 = vector.extract_strided_slice %4 {offsets = [8, 0], sizes = [8, 32], strides = [1, 1]} : vector<16x32xf32> to vector<8x32xf32>
    %12 = vector.extract_strided_slice %9 {offsets = [0, 0], sizes = [8, 32], strides = [1, 1]} : vector<16x32xf32> to vector<8x32xf32>
    %13 = vector.extract_strided_slice %9 {offsets = [8, 0], sizes = [8, 32], strides = [1, 1]} : vector<16x32xf32> to vector<8x32xf32>
    %14 = arith.mulf %10, %12 : vector<8x32xf32>
    %cst_10 = arith.constant dense<0.000000e+00> : vector<8xf32>
    %15 = vector.multi_reduction <add>, %14, %cst_10 [1] : vector<8x32xf32> to vector<8xf32>
    %16 = vector.shape_cast %15 : vector<8xf32> to vector<8x1xf32>
    %17 = arith.mulf %10, %13 : vector<8x32xf32>
    %cst_11 = arith.constant dense<0.000000e+00> : vector<8xf32>
    %18 = vector.multi_reduction <add>, %17, %cst_11 [1] : vector<8x32xf32> to vector<8xf32>
    %19 = vector.shape_cast %18 : vector<8xf32> to vector<8x1xf32>
    %20 = arith.mulf %11, %12 : vector<8x32xf32>
    %cst_12 = arith.constant dense<0.000000e+00> : vector<8xf32>
    %21 = vector.multi_reduction <add>, %20, %cst_12 [1] : vector<8x32xf32> to vector<8xf32>
    %22 = vector.shape_cast %21 : vector<8xf32> to vector<8x1xf32>
    %23 = arith.maximumf %16, %19 : vector<8x1xf32>
    %24 = arith.maximumf %23, %22 : vector<8x1xf32>
    %25 = arith.subf %16, %24 : vector<8x1xf32>
    %26 = math.exp %25 : vector<8x1xf32>
    %27 = arith.subf %19, %24 : vector<8x1xf32>
    %28 = math.exp %27 : vector<8x1xf32>
    %29 = arith.addf %26, %28 : vector<8x1xf32>
    %30 = arith.subf %22, %24 : vector<8x1xf32>
    %31 = math.exp %30 : vector<8x1xf32>
    %32 = arith.addf %29, %31 : vector<8x1xf32>
    %33 = math.log %32 : vector<8x1xf32>
    %34 = arith.addf %24, %33 : vector<8x1xf32>
    %35 = arith.subf %34, %16 : vector<8x1xf32>
    %36 = vector.shape_cast %35 : vector<8x1xf32> to vector<1x8x1xf32>
    %cst_13 = arith.constant dense<0.000000e+00> : vector<1xf32>
    %37 = vector.multi_reduction <add>, %36, %cst_13 [1, 2] : vector<1x8x1xf32> to vector<1xf32>
    %38 = vector.shape_cast %37 : vector<1xf32> to vector<1x1x1xf32>
    %39 = vector.extract %38[0, 0, 0] : f32 from vector<1x1x1xf32>
    %cst_14 = arith.constant 8.000000e+00 : f32
    %40 = arith.divf %39, %cst_14 : f32
    %41 = vector.broadcast %40 : f32 to vector<1x1xf32>
    %c0_15 = arith.constant 0 : index
    %c0_16 = arith.constant 0 : index
    %42 = vector.load %arg4[%c0_15, %c0_16] : memref<1x1xf32, #tpu.memory_space<vmem>>, vector<1x1xf32>
    tpu.vector_store %arg4[%c0_15, %c0_16], %41 {strides = array<i32>} : memref<1x1xf32, #tpu.memory_space<vmem>>, vector<1x1xf32>,
    return
  }
}

module attributes {stable_mosaic.version = 11 : i64} {
  func.func @_update_kernel(%arg0: i32, %arg1: i32, %arg2: memref<32x16xbf16, #tpu.memory_space<vmem>>, %arg3: memref<16x64xf32, #tpu.memory_space<vmem>>, %arg4: memref<32x64xf32, #tpu.memory_space<vmem>>, %arg5: memref<64x64xf32, #tpu.memory_space<vmem>>, %arg6: memref<32x64xf32, #tpu.memory_space<vmem>>, %arg7: memref<32x64xf32, #tpu.memory_space<vmem>>) attributes {dimension_semantics = [#tpu.dimension_semantics<parallel>, #tpu.dimension_semantics<arbitrary>], iteration_bounds = array<i64: 1, 1>, scalar_prefetch = 0 : i64, scratch_operands = 1 : i64, tpu.core_type = #tpu.core_type<tc>, window_params = [{transform_indices = @transform_0, window_bounds = array<i64: 32, 16>}, {transform_indices = @transform_1, window_bounds = array<i64: 16, 64>}, {transform_indices = @transform_2, window_bounds = array<i64: 32, 64>}, {pipeline_mode = #tpu.pipeline_mode<synchronous>, transform_indices = @transform_3, window_bounds = array<i64: 64, 64>}, {transform_indices = @transform_4, window_bounds = array<i64: 32, 64>}]} {
    %c0_i32 = arith.constant 0 : i32
    %0 = arith.cmpi eq, %arg1, %c0_i32 : i32
    %1 = arith.extui %0 : i1 to i32
    %c0_i32_0 = arith.constant 0 : i32
    %2 = arith.cmpi ne, %1, %c0_i32_0 : i32
    scf.if %2 {
      %cst_10 = arith.constant 0.000000e+00 : f32
      %13 = vector.broadcast %cst_10 : f32 to vector<32x64xf32>
      %c0_11 = arith.constant 0 : index
      %c0_12 = arith.constant 0 : index
      %14 = vector.load %arg7[%c0_11, %c0_12] : memref<32x64xf32, #tpu.memory_space<vmem>>, vector<32x64xf32>
      tpu.vector_store %arg7[%c0_11, %c0_12], %13 {strides = array<i32>} : memref<32x64xf32, #tpu.memory_space<vmem>>, vector<32x64xf32>,
    } else {
    }
    %c0 = arith.constant 0 : index
    %c0_1 = arith.constant 0 : index
    %3 = vector.load %arg7[%c0, %c0_1] : memref<32x64xf32, #tpu.memory_space<vmem>>, vector<32x64xf32>
    %c0_2 = arith.constant 0 : index
    %c0_3 = arith.constant 0 : index
    %4 = vector.load %arg2[%c0_2, %c0_3] : memref<32x16xbf16, #tpu.memory_space<vmem>>, vector<32x16xbf16>
    %c0_4 = arith.constant 0 : index
    %c0_5 = arith.constant 0 : index
    %5 = vector.load %arg3[%c0_4, %c0_5] : memref<16x64xf32, #tpu.memory_space<vmem>>, vector<16x64xf32>
    %6 = arith.truncf %5 : vector<16x64xf32> to vector<16x64xbf16>
    %cst = arith.constant dense<0.000000e+00> : vector<32x64xf32>
    %7 = tpu.matmul %4, %6, %cst {dimension_numbers = #tpu.dot_dimension_numbers<[1], [0], [0], [1], [0, 0, 1, 1], [], []>} : vector<32x16xbf16>, vector<16x64xbf16>, vector<32x64xf32> -> vector<32x64xf32>
    %8 = arith.addf %3, %7 : vector<32x64xf32>
    %c0_6 = arith.constant 0 : index
    %c0_7 = arith.constant 0 : index
    %9 = vector.load %arg7[%c0_6, %c0_7] : memref<32x64xf32, #tpu.memory_space<vmem>>, vector<32x64xf32>
    tpu.vector_store %arg7[%c0_6, %c0_7], %8 {strides = array<i32>} : memref<32x64xf32, #tpu.memory_space<vmem>>, vector<32x64xf32>,
    %c0_i32_8 = arith.constant 0 : i32
    %10 = arith.cmpi eq, %arg1, %c0_i32_8 : i32
    %11 = arith.extui %10 : i1 to i32
    %c0_i32_9 = arith.constant 0 : i32
    %12 = arith.cmpi ne, %11, %c0_i32_9 : i32
    scf.if %12 {
      %c0_10 = arith.constant 0 : index
      %c0_11 = arith.constant 0 : index
      %13 = vector.load %arg7[%c0_10, %c0_11] : memref<32x64xf32, #tpu.memory_space<vmem>>, vector<32x64xf32>
      %c0_12 = arith.constant 0 : index
      %c0_13 = arith.constant 0 : index
      %14 = vector.load %arg5[%c0_12, %c0_13] : memref<64x64xf32, #tpu.memory_space<vmem>>, vector<64x64xf32>
      %cst_14 = arith.constant dense<0.000000e+00> : vector<32x64xf32>
      %15 = tpu.matmul %13, %14, %cst_14 {dimension_numbers = #tpu.dot_dimension_numbers<[1], [0], [0], [1], [0, 0, 1, 1], [], []>} : vector<32x64xf32>, vector<64x64xf32>, vector<32x64xf32> -> vector<32x64xf32>
      %16 = math.tanh %15 : vector<32x64xf32>
      %c0_15 = arith.constant 0 : index
      %c0_16 = arith.constant 0 : index
      %17 = vector.load %arg4[%c0_15, %c0_16] : memref<32x64xf32, #tpu.memory_space<vmem>>, vector<32x64xf32>
      %18 = arith.addf %17, %16 : vector<32x64xf32>
      %c0_17 = arith.constant 0 : index
      %c0_18 = arith.constant 0 : index
      %19 = vector.load %arg6[%c0_17, %c0_18] : memref<32x64xf32, #tpu.memory_space<vmem>>, vector<32x64xf32>
      tpu.vector_store %arg6[%c0_17, %c0_18], %18 {strides = array<i32>} : memref<32x64xf32, #tpu.memory_space<vmem>>, vector<32x64xf32>,
    } else {
    }
    return
  }
  func.func @transform_0(%arg0: i32, %arg1: i32) -> (i32, i32) {
    %c0_i32 = arith.constant 0 : i32
    return %arg0, %arg1 : i32, i32
  }
  func.func @transform_1(%arg0: i32, %arg1: i32) -> (i32, i32) {
    %c0_i32 = arith.constant 0 : i32
    %c0_i32_0 = arith.constant 0 : i32
    return %arg1, %c0_i32 : i32, i32
  }
  func.func @transform_2(%arg0: i32, %arg1: i32) -> (i32, i32) {
    %c0_i32 = arith.constant 0 : i32
    %c0_i32_0 = arith.constant 0 : i32
    return %arg0, %c0_i32 : i32, i32
  }
  func.func @transform_3(%arg0: i32, %arg1: i32) -> (i32, i32) {
    %c0_i32 = arith.constant 0 : i32
    %c0_i32_0 = arith.constant 0 : i32
    %c0_i32_1 = arith.constant 0 : i32
    return %c0_i32, %c0_i32_0 : i32, i32
  }
  func.func @transform_4(%arg0: i32, %arg1: i32) -> (i32, i32) {
    %c0_i32 = arith.constant 0 : i32
    %c0_i32_0 = arith.constant 0 : i32
    return %arg0, %c0_i32 : i32, i32
  }
}

module attributes {stable_mosaic.version = 11 : i64} {
  func.func @_update_kernel(%arg0: i32, %arg1: i32, %arg2: memref<16x32xbf16, #tpu.memory_space<vmem>>, %arg3: memref<32x64xf32, #tpu.memory_space<vmem>>, %arg4: memref<16x64xf32, #tpu.memory_space<vmem>>, %arg5: memref<64x64xf32, #tpu.memory_space<vmem>>, %arg6: memref<16x64xf32, #tpu.memory_space<vmem>>, %arg7: memref<16x64xf32, #tpu.memory_space<vmem>>) attributes {dimension_semantics = [#tpu.dimension_semantics<parallel>, #tpu.dimension_semantics<arbitrary>], iteration_bounds = array<i64: 1, 1>, scalar_prefetch = 0 : i64, scratch_operands = 1 : i64, tpu.core_type = #tpu.core_type<tc>, window_params = [{transform_indices = @transform_0, window_bounds = array<i64: 16, 32>}, {transform_indices = @transform_1, window_bounds = array<i64: 32, 64>}, {transform_indices = @transform_2, window_bounds = array<i64: 16, 64>}, {pipeline_mode = #tpu.pipeline_mode<synchronous>, transform_indices = @transform_3, window_bounds = array<i64: 64, 64>}, {transform_indices = @transform_4, window_bounds = array<i64: 16, 64>}]} {
    %c0_i32 = arith.constant 0 : i32
    %0 = arith.cmpi eq, %arg1, %c0_i32 : i32
    %1 = arith.extui %0 : i1 to i32
    %c0_i32_0 = arith.constant 0 : i32
    %2 = arith.cmpi ne, %1, %c0_i32_0 : i32
    scf.if %2 {
      %cst_10 = arith.constant 0.000000e+00 : f32
      %13 = vector.broadcast %cst_10 : f32 to vector<16x64xf32>
      %c0_11 = arith.constant 0 : index
      %c0_12 = arith.constant 0 : index
      %14 = vector.load %arg7[%c0_11, %c0_12] : memref<16x64xf32, #tpu.memory_space<vmem>>, vector<16x64xf32>
      tpu.vector_store %arg7[%c0_11, %c0_12], %13 {strides = array<i32>} : memref<16x64xf32, #tpu.memory_space<vmem>>, vector<16x64xf32>,
    } else {
    }
    %c0 = arith.constant 0 : index
    %c0_1 = arith.constant 0 : index
    %3 = vector.load %arg7[%c0, %c0_1] : memref<16x64xf32, #tpu.memory_space<vmem>>, vector<16x64xf32>
    %c0_2 = arith.constant 0 : index
    %c0_3 = arith.constant 0 : index
    %4 = vector.load %arg2[%c0_2, %c0_3] : memref<16x32xbf16, #tpu.memory_space<vmem>>, vector<16x32xbf16>
    %c0_4 = arith.constant 0 : index
    %c0_5 = arith.constant 0 : index
    %5 = vector.load %arg3[%c0_4, %c0_5] : memref<32x64xf32, #tpu.memory_space<vmem>>, vector<32x64xf32>
    %6 = arith.truncf %5 : vector<32x64xf32> to vector<32x64xbf16>
    %cst = arith.constant dense<0.000000e+00> : vector<16x64xf32>
    %7 = tpu.matmul %4, %6, %cst {dimension_numbers = #tpu.dot_dimension_numbers<[1], [0], [0], [1], [0, 0, 1, 1], [], []>} : vector<16x32xbf16>, vector<32x64xbf16>, vector<16x64xf32> -> vector<16x64xf32>
    %8 = arith.addf %3, %7 : vector<16x64xf32>
    %c0_6 = arith.constant 0 : index
    %c0_7 = arith.constant 0 : index
    %9 = vector.load %arg7[%c0_6, %c0_7] : memref<16x64xf32, #tpu.memory_space<vmem>>, vector<16x64xf32>
    tpu.vector_store %arg7[%c0_6, %c0_7], %8 {strides = array<i32>} : memref<16x64xf32, #tpu.memory_space<vmem>>, vector<16x64xf32>,
    %c0_i32_8 = arith.constant 0 : i32
    %10 = arith.cmpi eq, %arg1, %c0_i32_8 : i32
    %11 = arith.extui %10 : i1 to i32
    %c0_i32_9 = arith.constant 0 : i32
    %12 = arith.cmpi ne, %11, %c0_i32_9 : i32
    scf.if %12 {
      %c0_10 = arith.constant 0 : index
      %c0_11 = arith.constant 0 : index
      %13 = vector.load %arg7[%c0_10, %c0_11] : memref<16x64xf32, #tpu.memory_space<vmem>>, vector<16x64xf32>
      %c0_12 = arith.constant 0 : index
      %c0_13 = arith.constant 0 : index
      %14 = vector.load %arg5[%c0_12, %c0_13] : memref<64x64xf32, #tpu.memory_space<vmem>>, vector<64x64xf32>
      %cst_14 = arith.constant dense<0.000000e+00> : vector<16x64xf32>
      %15 = tpu.matmul %13, %14, %cst_14 {dimension_numbers = #tpu.dot_dimension_numbers<[1], [0], [0], [1], [0, 0, 1, 1], [], []>} : vector<16x64xf32>, vector<64x64xf32>, vector<16x64xf32> -> vector<16x64xf32>
      %16 = math.tanh %15 : vector<16x64xf32>
      %c0_15 = arith.constant 0 : index
      %c0_16 = arith.constant 0 : index
      %17 = vector.load %arg4[%c0_15, %c0_16] : memref<16x64xf32, #tpu.memory_space<vmem>>, vector<16x64xf32>
      %18 = arith.addf %17, %16 : vector<16x64xf32>
      %c0_17 = arith.constant 0 : index
      %c0_18 = arith.constant 0 : index
      %19 = vector.load %arg6[%c0_17, %c0_18] : memref<16x64xf32, #tpu.memory_space<vmem>>, vector<16x64xf32>
      tpu.vector_store %arg6[%c0_17, %c0_18], %18 {strides = array<i32>} : memref<16x64xf32, #tpu.memory_space<vmem>>, vector<16x64xf32>,
    } else {
    }
    return
  }
  func.func @transform_0(%arg0: i32, %arg1: i32) -> (i32, i32) {
    %c0_i32 = arith.constant 0 : i32
    return %arg0, %arg1 : i32, i32
  }
  func.func @transform_1(%arg0: i32, %arg1: i32) -> (i32, i32) {
    %c0_i32 = arith.constant 0 : i32
    %c0_i32_0 = arith.constant 0 : i32
    return %arg1, %c0_i32 : i32, i32
  }
  func.func @transform_2(%arg0: i32, %arg1: i32) -> (i32, i32) {
    %c0_i32 = arith.constant 0 : i32
    %c0_i32_0 = arith.constant 0 : i32
    return %arg0, %c0_i32 : i32, i32
  }
  func.func @transform_3(%arg0: i32, %arg1: i32) -> (i32, i32) {
    %c0_i32 = arith.constant 0 : i32
    %c0_i32_0 = arith.constant 0 : i32
    %c0_i32_1 = arith.constant 0 : i32
    return %c0_i32, %c0_i32_0 : i32, i32
  }
  func.func @transform_4(%arg0: i32, %arg1: i32) -> (i32, i32) {
    %c0_i32 = arith.constant 0 : i32
    %c0_i32_0 = arith.constant 0 : i32
    return %arg0, %c0_i32 : i32, i32
  }
}

</mosaic_0001>

<bundles_post_ra>
// kernel: cpmr_forward.7
= control target key start
LH: loop header
LB: loop body
LE: loop exit
PB: predicated region body
PF: predicated region fallthrough
CT: control target
= control target key end

     0   :  { %s450_s0 = inlined_call_operand.vmem [shape: f32[16,64], index: 0, kind: input, shape index: {}]   ;;  %s451_s1 = inlined_call_operand.vmem [shape: f32[16,64], index: 1, kind: input, shape index: {}]   ;;  %s452_s2 = inlined_call_operand.vmem [shape: f32[64,32], index: 2, kind: input, shape index: {}]   ;;  %s453_s3 = inlined_call_operand.vmem [shape: f32[64,32], index: 3, kind: input, shape index: {}]   ;;  %s454_s4 = inlined_call_operand.hbm [shape: f32[1,1], index: 4, kind: output, shape index: {}]  }
   0x1   :  { %v27_v0 = vld [vmem:[%s452_s2 + $0x38] sm:$0xff]  ;;  %v26_v2 = vld [vmem:[%s452_s2 + $0x30] sm:$0xff]  ;;  %v25_v4 = vld [vmem:[%s452_s2 + $0x28] sm:$0xff] }
   0x2   :  { %v121_v1 = vld [vmem:[%s453_s3 + $0x38] sm:$0xff]  ;;  %290 = vmatprep.subr.mxu0 %v27_v0  ;;  %v120_v3 = vld [vmem:[%s453_s3 + $0x30] sm:$0xff]  ;;  %v119_v5 = vld [vmem:[%s453_s3 + $0x28] sm:$0xff] }
   0x3   :  { %309 = vmatprep.subr.mxu1 %v121_v1  ;;  %291 = vmatpush3.msra.mxu0 %v27_v0  ;;  %v24_v6 = vld [vmem:[%s452_s2 + $0x20] sm:$0xff]  ;;  %v23_v8 = vld [vmem:[%s452_s2 + $0x18] sm:$0xff] }
   0x4   :  { %310 = vmatpush3.msra.mxu1 %v121_v1  ;;  %292 = vmatprep.subr.mxu0 %v26_v2  ;;  %v118_v7 = vld [vmem:[%s453_s3 + $0x20] sm:$0xff]  ;;  %v117_v9 = vld [vmem:[%s453_s3 + $0x18] sm:$0xff] }
   0x5   :  { %311 = vmatprep.subr.mxu1 %v120_v3  ;;  %293 = vmatpush3.msra.mxu0 %v26_v2 }
   0x6   :  { %312 = vmatpush3.msra.mxu1 %v120_v3  ;;  %294 = vmatprep.subr.mxu0 %v25_v4 }
   0x7   :  { %313 = vmatprep.subr.mxu1 %v119_v5  ;;  %295 = vmatpush3.msra.mxu0 %v25_v4 }
   0x8   :  { %314 = vmatpush3.msra.mxu1 %v119_v5 }
   0x9   :  { %9 = vsyncpa [#allocation3], 0  ;;  %296 = vmatprep.subr.mxu0 %v24_v6  ;;  %315 = vmatprep.subr.mxu1 %v118_v7  ;;  %v22_v10 = vld [vmem:[%s452_s2 + $0x10] sm:$0xff]  ;;  %v21_v12 = vld [vmem:[%s452_s2 + $0x8] sm:$0xff]  ;;  %vm28_vm0 = vcmask 523264   ;;  %vm206_vm1 = vcmask 261120  }
   0xa   :  { %297 = vmatpush3.msra.mxu0 %v24_v6  ;;  %316 = vmatpush3.msra.mxu1 %v118_v7  ;;  %v116_v11 = vld [vmem:[%s453_s3 + $0x10] sm:$0xff]  ;;  %v115_v13 = vld [vmem:[%s453_s3 + $0x8] sm:$0xff]  ;;  %v20_v14 = vld [vmem:[%s452_s2] sm:$0xff]  ;;  %vm235_vm2 = vcmask 7168   ;;  %vm250_vm3 = vcmask 0  }
   0xb   :  { %298 = vmatprep.subr.mxu0 %v23_v8  ;;  %317 = vmatprep.subr.mxu1 %v117_v9  ;;  %v114_v15 = vld [vmem:[%s453_s3] sm:$0xff]  ;;  %v19_v18 = vld [vmem:[%s450_s0 + $0x8] sm:$0xff] }
   0xc   :  { %299 = vmatpush3.msra.mxu0 %v23_v8  ;;  %318 = vmatpush3.msra.mxu1 %v117_v9  ;;  %v18_v16 = vld [vmem:[%s450_s0] sm:$0xff]  ;;  %v113_v19 = vld [vmem:[%s451_s1 + $0x8] sm:$0xff]  ;;  %s361_s0 = smov [#allocation2]  }
   0xd   :  { %300 = vmatprep.subr.mxu0 %v22_v10  ;;  %319 = vmatprep.subr.mxu1 %v116_v11  ;;  %v112_v17 = vld [vmem:[%s451_s1] sm:$0xff]  ;;  %s258_s1 = sshll.u32 %s361_s0, 4  ;;  %s259_s1 = int_to_ptr.vmem [resolvable:$true] %s258_s1 }
   0xe   :  { %301 = vmatpush3.msra.mxu0 %v22_v10  ;;  %320 = vmatpush3.msra.mxu1 %v116_v11  ;;  %s339_s29 = scalar_lea.vmem %s259_s1, 16  ;;  %s343_s30 = scalar_lea.vmem %s259_s1, 32 }
   0xf   :  { %302 = vmatprep.subr.mxu0 %v21_v12  ;;  %321 = vmatprep.subr.mxu1 %v115_v13  ;;  %p340_p0 = scmp.ne.s32.totalorder %s259_s1, %s339_s29  ;;  %p344_p1 = scmp.lt.s32.totalorder %s259_s1, %s259_s1 }
  0x10   :  { %303 = vmatpush3.msra.mxu0 %v21_v12  ;;  %322 = vmatpush3.msra.mxu1 %v115_v13  ;;  %p345_p2 = scmp.lt.s32.totalorder %s343_s30, %s339_s29 }
  0x11   :  { %304 = vmatprep.subr.mxu0 %v20_v14  ;;  %323 = vmatprep.subr.mxu1 %v114_v15 }
  0x12   :  { %305 = vmatpush3.msra.mxu0 %v20_v14  ;;  %306 = vmatprep.mubr.msk.f32.mxu0 %vm28_vm0, %v18_v16  ;;  %p346_p3 = por %p345_p2, %p344_p1 }
  0x13   :  { %324 = vmatpush3.msra.mxu1 %v114_v15  ;;  %325 = vmatprep.mubr.msk.f32.mxu1 %vm28_vm0, %v112_v17 }
  0x14   :  { %307 = vmatmul.mubr.msk.f32.vlgmr.msra.gmra.mxu0 %vm28_vm0, %v19_v18  ;;  %326 = vmatmul.mubr.msk.f32.vlgmr.msra.gmra.mxu1 %vm28_vm0, %v113_v19  ;;  %p347_p4 = pnand %p346_p3, %p340_p0 }
  0xd4   :  { %v308_v20 = vpop.f32.mrf.mxu0  ;;  %v327_v21 = vpop.f32.mrf.mxu1 }
  0xd5   :  { %v111_v24 = vmax.f32 %v308_v20, 0.0  ;;  %v204_v27 = vmax.f32 %v327_v21, 0.0 }
  0xd6   :  { %v101_v22 = vpop.f32.mrf.mxu0  ;;  %v194_v23 = vpop.f32.mrf.mxu1 }
  0xd7   :  { %v110_v25 = vmax.f32 %v101_v22, 0.0  ;;  %v203_v26 = vmax.f32 %v194_v23, 0.0 }
  0xd9   :  { %v214_v28 = vmul.f32 %v203_v26, %v111_v24  ;;  %v205_v29 = vmul.f32 %v203_v26, %v110_v25  ;;  %v210_v30 = vmul.f32 %v204_v27, %v110_v25 }
  0xdb   :  { %v215_v31 = vsel %vm206_vm1, %v214_v28, 0.0  ;;  %v207_v32 = vsel %vm206_vm1, %v205_v29, 0.0  ;;  %v211_v33 = vsel %vm206_vm1, %v210_v30, 0.0 }
  0xdc   :  { %216 = vadd.xlane.f32.xlu1 %v215_v31  ;;  %208 = vadd.xlane.f32.xlu0 %v207_v32 }
  0xe0   :  { %212 = vadd.xlane.f32.xlu0 %v211_v33 }
 0x165   :  { %v209_v34 = vpop.xlane.xlu0 %208  ;;  %v217_v37 = vpop.xlane.xlu1 %216 }
 0x169   :  { %v213_v35 = vpop.xlane.xlu0 %212 }
 0x16a   :  { %v218_v36 = vmax.f32 %v209_v34, %v213_v35 }
 0x16c   :  { %v219_v38 = vmax.f32 %v218_v36, %v217_v37 }
 0x16e   :  { %v220_v39 = vsub.f32 %v209_v34, %v219_v38  ;;  %v223_v40 = vsub.f32 %v213_v35, %v219_v38  ;;  %v227_v41 = vsub.f32 %v217_v37, %v219_v38 }
 0x170   :  { %v221_v42 = vmul.f32 1.442695, %v220_v39  ;;  %v224_v43 = vmul.f32 1.442695, %v223_v40  ;;  %v228_v44 = vmul.f32 1.442695, %v227_v41 }
 0x172   :  { %331 = vpow2.f32 %v221_v42 }
 0x173   :  { %333 = vpow2.f32 %v224_v43 }
 0x174   :  { %335 = vpow2.f32 %v228_v44 }
 0x17f   :  { %v332_v45 = vpop.eup %331 }
 0x180   :  { %v334_v46 = vpop.eup %333 }
 0x181   :  { %v226_v47 = vadd.f32 %v334_v46, %v332_v45  ;;  %v336_v48 = vpop.eup %335 }
 0x183   :  { %v230_v49 = vadd.f32 %v336_v48, %v226_v47 }
 0x185   :  { %337 = vlog2.f32 %v230_v49 }
 0x192   :  { %v338_v50 = vpop.eup %337 }
 0x193   :  { %v232_v51 = vmul.f32 0.6931472, %v338_v50 }
 0x195   :  { %v233_v52 = vadd.f32 %v232_v51, %v219_v38 }
 0x197   :  { %v234_v53 = vsub.f32 %v233_v52, %v209_v34 }
 0x199   :  { %v236_v54 = vsel %vm235_vm2, %v234_v53, 0.0 }
 0x19a   :  { %237 = vadd.xlane.f32.xlu1 %v236_v54 }
 0x223   :  { %v238_v55 = vpop.xlane.xlu1 %237 }
 0x224   :  { %v239_v56 = vrot.slane %v238_v55, 4 }
 0x226   :  { %v240_v57 = vadd.f32 %v239_v56, %v238_v55 }
 0x228   :  { %v241_v58 = vrot.slane %v240_v57, 2 }
 0x22a   :  { %v242_v59 = vadd.f32 %v241_v58, %v240_v57 }
 0x22c   :  { %v243_v60 = vrot.slane %v242_v59, 1 }
 0x22e   :  { %v244_v61 = vadd.f32 %v243_v60, %v242_v59 }
 0x230   :  { %328 = vpush %v244_v61 }
 0x261   :  { %s329_s27 = spop %328 }
 0x262   :  { %s248_s28 = smul.f32 0.125, %s329_s27 }
 0x264   :  { %v249_v62 = vstv %s248_s28 }
 0x265   :  { %251 = vst.msk [vmem:[#allocation2] sm:$0x1] %vm250_vm3, %v249_v62 }
 0x266   :  { %350 = shalt.err (!%p347_p4)
}
 0x267   :  { %261 = dma.vmem_to_hbm [thread:$0]  %s259_s1, 16, %s454_s4, [#allocation3]  }
 0x268   :  { %359 = dma.done.wait [#allocation3], 16  }
 0x269   :  { %360 = vsyncadd [#allocation3], 4294967280 }
 0x26a   :  { %265 = vsyncpa [#allocation3], 1 }

// kernel: cpmr_forward.9
= control target key start
LH: loop header
LB: loop body
LE: loop exit
PB: predicated region body
PF: predicated region fallthrough
CT: control target
= control target key end

     0   :  { %vm22_vm0 = vcmask 523264   ;;  %vm48_vm1 = vcmask 130048   ;;  %v307_v2 = vmov 0.0   ;;  %s409_s1 = inlined_call_operand.vmem [shape: f32[16,64], index: 1, kind: input, shape index: {}]   ;;  %s410_s0 = inlined_call_operand.vmem [shape: bf16[32,16], index: 0, kind: input, shape index: {}]   ;;  %s411_s3 = inlined_call_operand.vmem [shape: f32[64,64], index: 3, kind: input, shape index: {}]   ;;  %s412_s2 = inlined_call_operand.vmem [shape: f32[32,64], index: 2, kind: input, shape index: {}]   ;;  %s413_s4 = inlined_call_operand.vmem [shape: f32[32,64], index: 4, kind: output, shape index: {}]  }
   0x1   :  { %v35_v0 = vld [vmem:[%s409_s1] sm:$0xff]  ;;  %v36_v1 = vld [vmem:[%s409_s1 + $0x8] sm:$0xff]  ;;  %25 = vst.msk [vmem:[#allocation2 + $0x10] sm:$0xff] %vm22_vm0, %v307_v2  ;;  %23 = vst.msk [vmem:[#allocation2] sm:$0xff] %vm22_vm0, %v307_v2 }
   0x2   :  { %24 = vst.msk [vmem:[#allocation2 + $0x8] sm:$0xff] %vm22_vm0, %v307_v2  ;;  %26 = vst.msk [vmem:[#allocation2 + $0x18] sm:$0xff] %vm22_vm0, %v307_v2  ;;  %v37_v3 = vpack.c.bf16 %v36_v1, %v35_v0  ;;  %v297_v4 = vld [vmem:[%s410_s0] sm:$0xff]   ;;  %v298_v5 = vld [vmem:[%s410_s0 + $0x8] sm:$0xff]  }
   0x3   :  { %270 = vmatprep.mubr.msk.bf16.mxu0 %vm48_vm1, %v297_v4  ;;  %v127_v6 = vld [vmem:[%s411_s3 + $0x38] sm:$0xff]  ;;  %v126_v7 = vld [vmem:[%s411_s3 + $0x30] sm:$0xff]  ;;  %v125_v8 = vld [vmem:[%s411_s3 + $0x28] sm:$0xff] }
   0x4   :  { %268 = vmatprep.subr.bf16.mxu0 %v37_v3  ;;  %274 = vmatprep.subr.mxu1 %v127_v6  ;;  %v124_v9 = vld [vmem:[%s411_s3 + $0x20] sm:$0xff]  ;;  %v123_v10 = vld [vmem:[%s411_s3 + $0x18] sm:$0xff]  ;;  %v122_v11 = vld [vmem:[%s411_s3 + $0x10] sm:$0xff] }
   0x5   :  { %269 = vmatpush3.bf16.msra.mxu0 %v37_v3  ;;  %275 = vmatpush3.msra.mxu1 %v127_v6  ;;  %v121_v12 = vld [vmem:[%s411_s3 + $0x8] sm:$0xff]  ;;  %v120_v13 = vld [vmem:[%s411_s3] sm:$0xff]  ;;  %v232_v39 = vld [vmem:[%s412_s2 + $0x18] sm:$0xff] }
   0x6   :  { %276 = vmatprep.subr.mxu1 %v126_v7  ;;  %v230_v34 = vld [vmem:[%s412_s2 + $0x8] sm:$0xff]  ;;  %v229_v36 = vld [vmem:[%s412_s2] sm:$0xff]  ;;  %v231_v42 = vld [vmem:[%s412_s2 + $0x10] sm:$0xff] }
   0x7   :  { %277 = vmatpush3.msra.mxu1 %v126_v7 }
   0x8   :  { %271 = vmatmul.mubr.msk.bf16.vlgmr.msra.gmra.mxu0 %vm48_vm1, %v298_v5  ;;  %278 = vmatprep.subr.mxu1 %v125_v8  ;;  %v29_v14 = vld [vmem:[#allocation2 + $0x10] sm:$0xff]  ;;  %v27_v16 = vld [vmem:[#allocation2] sm:$0xff] }
   0x9   :  { %279 = vmatpush3.msra.mxu1 %v125_v8  ;;  %v30_v19 = vld [vmem:[#allocation2 + $0x18] sm:$0xff]  ;;  %v28_v22 = vld [vmem:[#allocation2 + $0x8] sm:$0xff] }
   0xa   :  { %280 = vmatprep.subr.mxu1 %v124_v9 }
   0xb   :  { %281 = vmatpush3.msra.mxu1 %v124_v9 }
   0xc   :  { %282 = vmatprep.subr.mxu1 %v123_v10 }
   0xd   :  { %283 = vmatpush3.msra.mxu1 %v123_v10 }
   0xe   :  { %284 = vmatprep.subr.mxu1 %v122_v11 }
   0xf   :  { %285 = vmatpush3.msra.mxu1 %v122_v11 }
  0x10   :  { %286 = vmatprep.subr.mxu1 %v121_v12 }
  0x11   :  { %287 = vmatpush3.msra.mxu1 %v121_v12 }
  0x12   :  { %288 = vmatprep.subr.mxu1 %v120_v13 }
  0x13   :  { %289 = vmatpush3.msra.mxu1 %v120_v13 }
  0xc8   :  { %v272_v15 = vpop.f32.mrf.mxu0 }
  0xc9   :  { %v106_v17 = vadd.f32 %v272_v15, %v29_v14 }
  0xca   :  { %v89_v18 = vpop.f32.mrf.mxu0 }
  0xcb   :  { %111 = vst.msk [vmem:[#allocation2 + $0x10] sm:$0xff] %vm22_vm0, %v106_v17  ;;  %v104_v20 = vadd.f32 %v89_v18, %v27_v16 }
  0xcc   :  { %v273_v21 = vpop.f32.mrf.mxu0 }
  0xcd   :  { %109 = vst.msk [vmem:[#allocation2] sm:$0xff] %vm22_vm0, %v104_v20  ;;  %v107_v23 = vadd.f32 %v273_v21, %v30_v19 }
  0xce   :  { %v92_v24 = vpop.f32.mrf.mxu0 }
  0xcf   :  { %112 = vst.msk [vmem:[#allocation2 + $0x18] sm:$0xff] %vm22_vm0, %v107_v23  ;;  %v105_v25 = vadd.f32 %v92_v24, %v28_v22 }
  0xd1   :  { %110 = vst.msk [vmem:[#allocation2 + $0x8] sm:$0xff] %vm22_vm0, %v105_v25 }
  0xd2   :  { %v118_v28 = vld [vmem:[#allocation2 + $0x10] sm:$0xff] }
  0xd4   :  { %v116_v26 = vld [vmem:[#allocation2] sm:$0xff] }
  0xd5   :  { %290 = vmatprep.mubr.msk.f32.mxu1 %vm22_vm0, %v116_v26 }
  0xd6   :  { %v119_v29 = vld [vmem:[#allocation2 + $0x18] sm:$0xff] }
  0xd8   :  { %v117_v27 = vld [vmem:[#allocation2 + $0x8] sm:$0xff] }
  0xd9   :  { %291 = vmatmul.mubr.msk.f32.vlgmr.msra.gmra.mxu1 %vm22_vm0, %v117_v27 }
  0xda   :  { %293 = vmatprep.mubr.msk.f32.mxu1 %vm22_vm0, %v118_v28 }
  0xdd   :  { %294 = vmatmul.mubr.msk.f32.gmra.mxu1 %vm22_vm0, %v119_v29 }
 0x199   :  { %v292_v30 = vpop.f32.mrf.mxu1 }
 0x19a   :  { %299 = vtanh.f32 %v292_v30 }
 0x19b   :  { %v206_v31 = vpop.f32.mrf.mxu1 }
 0x19c   :  { %301 = vtanh.f32 %v206_v31 }
 0x19d   :  { %v295_v32 = vpop.f32.mrf.mxu1 }
 0x19e   :  { %303 = vtanh.f32 %v295_v32 }
 0x19f   :  { %v216_v33 = vpop.f32.mrf.mxu1 }
 0x1a0   :  { %305 = vtanh.f32 %v216_v33 }
 0x1a7   :  { %v300_v35 = vpop.eup %299 }
 0x1a8   :  { %v234_v37 = vadd.f32 %v300_v35, %v230_v34 }
 0x1a9   :  { %v302_v38 = vpop.eup %301 }
 0x1aa   :  { %238 = vst.msk [vmem:[%s413_s4 + $0x8] sm:$0xff] %vm22_vm0, %v234_v37  ;;  %v233_v40 = vadd.f32 %v302_v38, %v229_v36 }
 0x1ab   :  { %v304_v41 = vpop.eup %303 }
 0x1ac   :  { %237 = vst.msk [vmem:[%s413_s4] sm:$0xff] %vm22_vm0, %v233_v40  ;;  %v236_v43 = vadd.f32 %v304_v41, %v232_v39 }
 0x1ad   :  { %v306_v44 = vpop.eup %305 }
 0x1ae   :  { %240 = vst.msk [vmem:[%s413_s4 + $0x18] sm:$0xff] %vm22_vm0, %v236_v43  ;;  %v235_v45 = vadd.f32 %v306_v44, %v231_v42 }
 0x1b0   :  { %239 = vst.msk [vmem:[%s413_s4 + $0x10] sm:$0xff] %vm22_vm0, %v235_v45 }

// kernel: cpmr_forward.5
= control target key start
LH: loop header
LB: loop body
LE: loop exit
PB: predicated region body
PF: predicated region fallthrough
CT: control target
= control target key end

     0   :  { %18 = vsyncpa [#allocation5], 0  ;;  %s727_s0 = inlined_call_operand.vmem [shape: f32[2,1], index: 0, kind: input, shape index: {}]   ;;  %s728_s1 = inlined_call_operand.vmem [shape: bf16[16,32], index: 1, kind: input, shape index: {}]   ;;  %s729_s2 = inlined_call_operand.vmem [shape: bf16[16,32], index: 2, kind: input, shape index: {}]   ;;  %s730_s3 = inlined_call_operand.vmem [shape: f32[32,32], index: 3, kind: input, shape index: {}]   ;;  %s731_s4 = inlined_call_operand.vmem [shape: f32[32,32], index: 4, kind: input, shape index: {}]   ;;  %s732_s5 = inlined_call_operand.vmem [shape: f32[16,32], index: 5, kind: input, shape index: {}]   ;;  %s733_s6 = inlined_call_operand.vmem [shape: f32[16,32], index: 6, kind: input, shape index: {}]   ;;  %s734_s7 = inlined_call_operand.vmem [shape: f32[16,1], index: 7, kind: input, shape index: {}]   ;;  %s735_s8 = inlined_call_operand.vmem [shape: f32[16,32], index: 8, kind: input, shape index: {}]   ;;  %s736_s9 = inlined_call_operand.vmem [shape: f32[32,32], index: 9, kind: input, shape index: {}]   ;;  %s737_s10 = inlined_call_operand.vmem [shape: f32[32,32], index: 10, kind: input, shape index: {}]   ;;  %s738_s11 = inlined_call_operand.vmem [shape: f32[16,32], index: 11, kind: output, shape index: {0}]   ;;  %s739_s12 = inlined_call_operand.vmem [shape: f32[16,32], index: 12, kind: output, shape index: {1}]  }
   0x1   :  { %s25_s23 = sshll.u32 %s727_s0, 4  ;;  %s26_s23 = int_to_ptr.vmem [resolvable:$true] %s25_s23 }
   0x2   :  { %s533_s24 = scalar_lea.vmem %s26_s23, 32  ;;  %p538_p1 = scmp.lt.s32.totalorder %s26_s23, %s26_s23 }
   0x3   :  { %p534_p0 = scmp.ne.s32.totalorder %s26_s23, %s533_s24  ;;  %p539_p2 = scmp.lt.s32.totalorder %s533_s24, %s533_s24 }
   0x5   :  { %p540_p3 = por %p539_p2, %p538_p1 }
   0x7   :  { %p541_p4 = pnand %p540_p3, %p534_p0 }
   0x9   :  { %544 = shalt.err (!%p541_p4)
}
   0xa   :  { %s547_s25 = smov [#allocation4]  }
   0xb   :  { %28 = dma.vmem_to_smem %s26_s23, 32, %s547_s25, [#allocation5]  }
   0xc   :  { %545 = dma.done.wait [#allocation5], 32  }
   0xd   :  { %546 = vsyncadd [#allocation5], 4294967264 }
   0xe   :  { %52 = sfence }
   0xf   :  { %v65_v0 = vld [vmem:[%s730_s3 + $0x10] sm:$0xff]  ;;  %v66_v1 = vld [vmem:[%s730_s3 + $0x18] sm:$0xff]  ;;  %vm58_vm0 = vcmask 261120   ;;  %v548_v3 = vmov 0.0   ;;  %v63_v6 = vld [vmem:[%s730_s3] sm:$0xff]  ;;  %vm549_vm1 = vmmov 0  }
  0x10   :  { %v71_v2 = vld [vmem:[%s731_s4 + $0x10] sm:$0xff]  ;;  %471 = vmatprep.subr.bf16.mxu0 %v548_v3  ;;  %479 = vmatprep.subr.bf16.mxu1 %v548_v3  ;;  %v68_v4 = vpack.c.bf16 %v66_v1, %v65_v0  ;;  %v72_v5 = vld [vmem:[%s731_s4 + $0x18] sm:$0xff]  ;;  %v64_v7 = vld [vmem:[%s730_s3 + $0x8] sm:$0xff]  ;;  %59 = vst.msk [vmem:[#allocation2] sm:$0xff] %vm58_vm0, %v548_v3  ;;  %s452_s20 = sld [smem:[#allocation4 + $0x80]]  ;;  %v550_v23 = vmov 0  }
  0x11   :  { %60 = vst.msk [vmem:[#allocation2 + $0x8] sm:$0xff] %vm58_vm0, %v548_v3  ;;  %61 = vst.msk [vmem:[#allocation3] sm:$0xff] %vm58_vm0, %v548_v3  ;;  %v74_v8 = vpack.c.bf16 %v72_v5, %v71_v2  ;;  %v69_v9 = vld [vmem:[%s731_s4] sm:$0xff]  ;;  %v70_v10 = vld [vmem:[%s731_s4 + $0x8] sm:$0xff]  ;;  %475 = vmatprep.mubr.msk.bf16.mxu0 %vm549_vm1, %v548_v3  ;;  %483 = vmatprep.mubr.msk.bf16.mxu1 %vm549_vm1, %v548_v3  ;;  %v67_v11 = vpack.c.bf16 %v64_v7, %v63_v6  ;;  %s371_s21 = sld [smem:[#allocation4]] }
  0x12   :  { %62 = vst.msk [vmem:[#allocation3 + $0x8] sm:$0xff] %vm58_vm0, %v548_v3  ;;  %472 = vmatpush3.bf16.msra.mxu0 %v68_v4  ;;  %v73_v12 = vpack.c.bf16 %v70_v10, %v69_v9  ;;  %v515_v13 = vld [vmem:[%s728_s1] sm:$0xff]   ;;  %v202_v15 = vld [vmem:[%s736_s9 + $0x18] sm:$0xff]  ;;  %v201_v17 = vld [vmem:[%s736_s9 + $0x10] sm:$0xff]  ;;  %514 = vset.pattern.permute.xlu1 %v550_v23 }
  0x13   :  { %480 = vmatpush3.bf16.msra.mxu1 %v74_v8  ;;  %473 = vmatprep.subr.bf16.mxu0 %v548_v3  ;;  %v516_v14 = vld [vmem:[%s729_s2] sm:$0xff]   ;;  %v289_v16 = vld [vmem:[%s737_s10 + $0x18] sm:$0xff]  ;;  %v288_v18 = vld [vmem:[%s737_s10 + $0x10] sm:$0xff] }
  0x14   :  { %481 = vmatprep.subr.bf16.mxu1 %v548_v3  ;;  %v200_v19 = vld [vmem:[%s736_s9 + $0x8] sm:$0xff]  ;;  %v199_v21 = vld [vmem:[%s736_s9] sm:$0xff]  ;;  %513 = vset.pattern.permute.xlu0 %v550_v23 }
  0x15   :  { %v287_v20 = vld [vmem:[%s737_s10 + $0x8] sm:$0xff]  ;;  %v286_v22 = vld [vmem:[%s737_s10] sm:$0xff] }
  0x16   :  { %474 = vmatpush3.bf16.msra.mxu0 %v67_v11  ;;  %s382_s22 = sand.u32 2147483647, %s452_s20  ;;  %v193_v24 = vld [vmem:[%s734_s7] sm:$0xff]  ;;  %v194_v25 = vld [vmem:[%s734_s7 + $0x8] sm:$0xff] }
  0x17   :  { %482 = vmatpush3.bf16.msra.mxu1 %v73_v12  ;;  %487 = vmatprep.subr.mxu0 %v202_v15  ;;  %s383_s10 = ssub.f32 0.0, %s382_s22  ;;  %s372_s25 = sand.u32 2147483647, %s371_s21  ;;  %v75_v40 = vld [vmem:[#allocation2] sm:$0xff]  ;;  %v392_v62 = vld [vmem:[%s732_s5 + $0x8] sm:$0xff] }
  0x18   :  { %498 = vmatprep.subr.mxu1 %v289_v16  ;;  %s373_s4 = ssub.f32 0.0, %s372_s25  ;;  %v133_v41 = vld [vmem:[#allocation3] sm:$0xff]  ;;  %v76_v47 = vld [vmem:[#allocation2 + $0x8] sm:$0xff]  ;;  %v391_v2 = vld [vmem:[%s732_s5] sm:$0xff] }
  0x19   :  { %476 = vmatmul.mubr.msk.bf16.vlgmr.msra.gmra.mxu0 %vm58_vm0, %v515_v13  ;;  %v384_v26 = vstv %s383_s10  ;;  %v134_v49 = vld [vmem:[#allocation3 + $0x8] sm:$0xff]  ;;  %v414_v0 = vld [vmem:[%s733_s6 + $0x8] sm:$0xff]  ;;  %v413_v3 = vld [vmem:[%s733_s6] sm:$0xff] }
  0x1a   :  { %484 = vmatmul.mubr.msk.bf16.vlgmr.msra.gmra.mxu1 %vm58_vm0, %v516_v14  ;;  %488 = vmatpush3.msra.mxu0 %v202_v15  ;;  %v385_v27 = vmul.f32 %v384_v26, %v193_v24  ;;  %v386_v28 = vmul.f32 %v384_v26, %v194_v25  ;;  %v374_v29 = vstv %s373_s4  ;;  %v196_v6 = vld [vmem:[%s735_s8 + $0x8] sm:$0xff]  ;;  %v195_v13 = vld [vmem:[%s735_s8] sm:$0xff] }
  0x1b   :  { %499 = vmatpush3.msra.mxu1 %v289_v16  ;;  %489 = vmatprep.subr.mxu0 %v201_v17  ;;  %v375_v30 = vmul.f32 %v374_v29, %v193_v24  ;;  %v376_v31 = vmul.f32 %v374_v29, %v194_v25 }
  0x1c   :  { %500 = vmatprep.subr.mxu1 %v288_v18  ;;  %490 = vmatpush3.msra.mxu0 %v201_v17  ;;  %v387_v32 = vmul.f32 1.442695, %v385_v27  ;;  %v389_v33 = vmul.f32 1.442695, %v386_v28 }
  0x1d   :  { %501 = vmatpush3.msra.mxu1 %v288_v18  ;;  %491 = vmatprep.subr.mxu0 %v200_v19  ;;  %v377_v34 = vmul.f32 1.442695, %v375_v30  ;;  %v379_v35 = vmul.f32 1.442695, %v376_v31 }
  0x1e   :  { %502 = vmatprep.subr.mxu1 %v287_v20  ;;  %492 = vmatpush3.msra.mxu0 %v200_v19  ;;  %517 = vpow2.f32 %v387_v32 }
  0x1f   :  { %503 = vmatpush3.msra.mxu1 %v287_v20  ;;  %493 = vmatprep.subr.mxu0 %v199_v21  ;;  %519 = vpow2.f32 %v389_v33 }
  0x20   :  { %504 = vmatprep.subr.mxu1 %v286_v22  ;;  %494 = vmatpush3.msra.mxu0 %v199_v21  ;;  %521 = vpow2.f32 %v377_v34 }
  0x21   :  { %505 = vmatpush3.msra.mxu1 %v286_v22  ;;  %523 = vpow2.f32 %v379_v35 }
  0x2b   :  { %v518_v36 = vpop.eup %517 }
  0x2c   :  { %v520_v37 = vpop.eup %519  ;;  %417 = vperm.xlu1 %514, %v518_v36  }
  0x2d   :  { %v522_v38 = vpop.eup %521 }
  0x2e   :  { %395 = vperm.xlu0 %513, %v522_v38   ;;  %v524_v39 = vpop.eup %523 }
  0x30   :  { %422 = vperm.xlu1 %514, %v520_v37  }
  0x32   :  { %400 = vperm.xlu0 %513, %v524_v39  }
  0xa7   :  { %v418_v61 = vpop.permute.xlu1 %417 }
  0xa8   :  { %v425_v11 = vmul.f32 %v418_v61, %v413_v3 }
  0xa9   :  { %v396_v60 = vpop.permute.xlu0 %395 }
  0xaa   :  { %v403_v8 = vmul.f32 %v396_v60, %v391_v2 }
  0xab   :  { %v423_v1 = vpop.permute.xlu1 %422 }
  0xac   :  { %v426_v5 = vmul.f32 %v423_v1, %v414_v0 }
  0xad   :  { %v401_v63 = vpop.permute.xlu0 %400 }
  0xae   :  { %v404_v4 = vmul.f32 %v401_v63, %v392_v62 }
  0xd9   :  { %v122_v42 = vpop.f32.mrf.mxu0 }
  0xda   :  { %v129_v43 = vadd.f32 %v122_v42, %v75_v40  ;;  %v179_v44 = vpop.f32.mrf.mxu1 }
  0xdb   :  { %v186_v45 = vadd.f32 %v179_v44, %v133_v41  ;;  %v477_v46 = vpop.f32.mrf.mxu0 }
  0xdc   :  { %131 = vst.msk [vmem:[#allocation2] sm:$0xff] %vm58_vm0, %v129_v43  ;;  %v485_v48 = vpop.f32.mrf.mxu1 }
  0xdd   :  { %188 = vst.msk [vmem:[#allocation3] sm:$0xff] %vm58_vm0, %v186_v45  ;;  %v125_v50 = vpop.f32.mrf.mxu0 }
  0xde   :  { %v130_v51 = vadd.f32 %v125_v50, %v76_v47  ;;  %v182_v52 = vpop.f32.mrf.mxu1 }
  0xdf   :  { %v187_v53 = vadd.f32 %v182_v52, %v134_v49  ;;  %v478_v54 = vpop.f32.mrf.mxu0 }
  0xe0   :  { %132 = vst.msk [vmem:[#allocation2 + $0x8] sm:$0xff] %vm58_vm0, %v130_v51  ;;  %v486_v55 = vpop.f32.mrf.mxu1 }
  0xe1   :  { %189 = vst.msk [vmem:[#allocation3 + $0x8] sm:$0xff] %vm58_vm0, %v187_v53 }
  0xe3   :  { %v197_v56 = vld [vmem:[#allocation2] sm:$0xff] }
  0xe4   :  { %495 = vmatprep.mubr.msk.f32.mxu0 %vm58_vm0, %v197_v56  ;;  %v284_v57 = vld [vmem:[#allocation3] sm:$0xff] }
  0xe5   :  { %506 = vmatprep.mubr.msk.f32.mxu1 %vm58_vm0, %v284_v57 }
  0xe7   :  { %v198_v58 = vld [vmem:[#allocation2 + $0x8] sm:$0xff] }
  0xe8   :  { %496 = vmatmul.mubr.msk.f32.vlgmr.msra.gmra.mxu0 %vm58_vm0, %v198_v58  ;;  %v285_v59 = vld [vmem:[#allocation3 + $0x8] sm:$0xff] }
  0xe9   :  { %507 = vmatmul.mubr.msk.f32.vlgmr.msra.gmra.mxu1 %vm58_vm0, %v285_v59 }
 0x1a8   :  { %v497_v7 = vpop.f32.mrf.mxu0 }
 0x1a9   :  { %v406_v9 = vadd.f32 %v497_v7, %v404_v4  ;;  %v508_v10 = vpop.f32.mrf.mxu1 }
 0x1aa   :  { %v428_v12 = vadd.f32 %v508_v10, %v426_v5  ;;  %v275_v14 = vpop.f32.mrf.mxu0 }
 0x1ab   :  { %v408_v15 = vadd.f32 %v406_v9, %v196_v6  ;;  %v405_v16 = vadd.f32 %v403_v8, %v275_v14  ;;  %v362_v17 = vpop.f32.mrf.mxu1 }
 0x1ac   :  { %v430_v18 = vadd.f32 %v428_v12, %v196_v6  ;;  %v427_v19 = vadd.f32 %v425_v11, %v362_v17 }
 0x1ad   :  { %525 = vtanh.f32 %v408_v15  ;;  %v407_v20 = vadd.f32 %v405_v16, %v195_v13 }
 0x1ae   :  { %527 = vtanh.f32 %v430_v18  ;;  %v429_v21 = vadd.f32 %v427_v19, %v195_v13 }
 0x1af   :  { %529 = vtanh.f32 %v407_v20 }
 0x1b0   :  { %531 = vtanh.f32 %v429_v21 }
 0x1ba   :  { %v526_v22 = vpop.eup %525 }
 0x1bb   :  { %v528_v23 = vpop.eup %527  ;;  %412 = vst.msk [vmem:[%s738_s11 + $0x8] sm:$0xff] %vm58_vm0, %v526_v22 }
 0x1bc   :  { %v530_v24 = vpop.eup %529  ;;  %434 = vst.msk [vmem:[%s739_s12 + $0x8] sm:$0xff] %vm58_vm0, %v528_v23 }
 0x1bd   :  { %v532_v25 = vpop.eup %531  ;;  %411 = vst.msk [vmem:[%s738_s11] sm:$0xff] %vm58_vm0, %v530_v24 }
 0x1be   :  { %433 = vst.msk [vmem:[%s739_s12] sm:$0xff] %vm58_vm0, %v532_v25 }
 0x1bf   :  { %443 = vsyncpa [#allocation5], 1 }

// kernel: cpmr_forward.6
= control target key start
LH: loop header
LB: loop body
LE: loop exit
PB: predicated region body
PF: predicated region fallthrough
CT: control target
= control target key end

     0   :  { %18 = vsyncpa [#allocation5], 0  ;;  %s954_s0 = inlined_call_operand.vmem [shape: f32[2,1], index: 0, kind: input, shape index: {}]   ;;  %s955_s1 = inlined_call_operand.vmem [shape: bf16[16,32], index: 1, kind: input, shape index: {}]   ;;  %s956_s2 = inlined_call_operand.vmem [shape: bf16[16,32], index: 2, kind: input, shape index: {}]   ;;  %s957_s3 = inlined_call_operand.vmem [shape: f32[16,32], index: 3, kind: input, shape index: {}]   ;;  %s958_s4 = inlined_call_operand.vmem [shape: f32[16,32], index: 4, kind: input, shape index: {}]   ;;  %s959_s5 = inlined_call_operand.vmem [shape: f32[32,32], index: 5, kind: input, shape index: {}]   ;;  %s960_s6 = inlined_call_operand.vmem [shape: f32[32,32], index: 6, kind: input, shape index: {}]   ;;  %s961_s7 = inlined_call_operand.vmem [shape: f32[32,1], index: 7, kind: input, shape index: {}]   ;;  %s962_s8 = inlined_call_operand.vmem [shape: f32[32,32], index: 8, kind: input, shape index: {}]   ;;  %s963_s9 = inlined_call_operand.vmem [shape: f32[32,32], index: 9, kind: input, shape index: {}]   ;;  %s964_s10 = inlined_call_operand.vmem [shape: f32[32,32], index: 10, kind: input, shape index: {}]   ;;  %s965_s11 = inlined_call_operand.vmem [shape: f32[32,32], index: 11, kind: output, shape index: {0}]   ;;  %s966_s12 = inlined_call_operand.vmem [shape: f32[32,32], index: 12, kind: output, shape index: {1}]  }
   0x1   :  { %s25_s23 = sshll.u32 %s954_s0, 4  ;;  %s26_s23 = int_to_ptr.vmem [resolvable:$true] %s25_s23 }
   0x2   :  { %s723_s24 = scalar_lea.vmem %s26_s23, 32  ;;  %p728_p1 = scmp.lt.s32.totalorder %s26_s23, %s26_s23 }
   0x3   :  { %p724_p0 = scmp.ne.s32.totalorder %s26_s23, %s723_s24  ;;  %p729_p2 = scmp.lt.s32.totalorder %s723_s24, %s723_s24 }
   0x5   :  { %p730_p3 = por %p729_p2, %p728_p1 }
   0x7   :  { %p731_p4 = pnand %p730_p3, %p724_p0 }
   0x9   :  { %734 = shalt.err (!%p731_p4)
}
   0xa   :  { %s737_s25 = smov [#allocation4]  }
   0xb   :  { %28 = dma.vmem_to_smem %s26_s23, 32, %s737_s25, [#allocation5]  }
   0xc   :  { %735 = dma.done.wait [#allocation5], 32  }
   0xd   :  { %736 = vsyncadd [#allocation5], 4294967264 }
   0xe   :  { %52 = sfence }
   0xf   :  { %v689_v0 = vld [vmem:[%s955_s1] sm:$0xff]   ;;  %vm58_vm0 = vcmask 261120   ;;  %v68_v2 = vld [vmem:[%s957_s3 + $0x8] sm:$0xff]  ;;  %v738_v7 = vmov 0.0   ;;  %vm101_vm1 = vcmask 130048   ;;  %v275_v13 = vld [vmem:[%s963_s9 + $0x18] sm:$0xff] }
  0x10   :  { %85 = vxpose.xlu0.c.b16.start.end [1/1] (short) (narrow) %v689_v0, 32  ;;  %v67_v1 = vld [vmem:[%s957_s3] sm:$0xff]  ;;  %v71_v6 = vld [vmem:[%s958_s4 + $0x8] sm:$0xff]  ;;  %61 = vst.msk [vmem:[#allocation2 + $0x10] sm:$0xff] %vm58_vm0, %v738_v7  ;;  %59 = vst.msk [vmem:[#allocation2] sm:$0xff] %vm58_vm0, %v738_v7  ;;  %s478_s29 = sld [smem:[#allocation4]] }
  0x11   :  { %v70_v3 = vld [vmem:[%s958_s4] sm:$0xff]  ;;  %v69_v5 = vpack.c.bf16 %v68_v2, %v67_v1  ;;  %60 = vst.msk [vmem:[#allocation2 + $0x8] sm:$0xff] %vm58_vm0, %v738_v7  ;;  %62 = vst.msk [vmem:[#allocation2 + $0x18] sm:$0xff] %vm58_vm0, %v738_v7  ;;  %v274_v14 = vld [vmem:[%s963_s9 + $0x10] sm:$0xff]  ;;  %v739_v21 = vmov 0   ;;  %s621_s30 = sld [smem:[#allocation4 + $0x80]] }
  0x12   :  { %v690_v4 = vld [vmem:[%s956_s2] sm:$0xff]   ;;  %63 = vst.msk [vmem:[#allocation3] sm:$0xff] %vm58_vm0, %v738_v7  ;;  %64 = vst.msk [vmem:[#allocation3 + $0x8] sm:$0xff] %vm58_vm0, %v738_v7  ;;  %v72_v8 = vpack.c.bf16 %v71_v6, %v70_v3  ;;  %v273_v15 = vld [vmem:[%s963_s9 + $0x8] sm:$0xff]  ;;  %687 = vset.pattern.permute.xlu1 %v739_v21 }
  0x13   :  { %65 = vst.msk [vmem:[#allocation3 + $0x10] sm:$0xff] %vm58_vm0, %v738_v7  ;;  %66 = vst.msk [vmem:[#allocation3 + $0x18] sm:$0xff] %vm58_vm0, %v738_v7  ;;  %644 = vmatprep.subr.bf16.mxu0 %v69_v5  ;;  %v272_v16 = vld [vmem:[%s963_s9] sm:$0xff]  ;;  %v380_v17 = vld [vmem:[%s964_s10 + $0x18] sm:$0xff] }
  0x14   :  { %645 = vmatpush3.bf16.msra.mxu0 %v69_v5  ;;  %650 = vmatprep.subr.bf16.mxu1 %v72_v8  ;;  %v379_v18 = vld [vmem:[%s964_s10 + $0x10] sm:$0xff]  ;;  %v378_v19 = vld [vmem:[%s964_s10 + $0x8] sm:$0xff]  ;;  %v377_v20 = vld [vmem:[%s964_s10] sm:$0xff] }
  0x15   :  { %178 = vxpose.xlu0.c.b16.start.end [1/1] (short) (narrow) %v690_v4, 32  ;;  %651 = vmatpush3.bf16.msra.mxu1 %v72_v8  ;;  %v260_v22 = vld [vmem:[%s961_s7] sm:$0xff]  ;;  %v261_v23 = vld [vmem:[%s961_s7 + $0x8] sm:$0xff]  ;;  %v263_v24 = vld [vmem:[%s961_s7 + $0x18] sm:$0xff] }
  0x16   :  { %656 = vmatprep.subr.mxu0 %v275_v13  ;;  %670 = vmatprep.subr.mxu1 %v380_v17  ;;  %s479_s13 = sand.u32 2147483647, %s478_s29  ;;  %v262_v25 = vld [vmem:[%s961_s7 + $0x10] sm:$0xff] }
  0x17   :  { %s480_s10 = ssub.f32 0.0, %s479_s13  ;;  %s495_s3 = sand.u32 2147483647, %s621_s30  ;;  %v75_v52 = vld [vmem:[#allocation2 + $0x10] sm:$0xff]  ;;  %v73_v54 = vld [vmem:[#allocation2] sm:$0xff] }
  0x18   :  { %s496_s4 = ssub.f32 0.0, %s495_s3  ;;  %v76_v57 = vld [vmem:[#allocation2 + $0x18] sm:$0xff]  ;;  %v74_v60 = vld [vmem:[#allocation2 + $0x8] sm:$0xff] }
  0x19   :  { %v481_v26 = vstv %s480_s10  ;;  %v166_v2 = vld [vmem:[#allocation3] sm:$0xff] }
  0x1a   :  { %v482_v27 = vmul.f32 %v481_v26, %v260_v22  ;;  %v483_v28 = vmul.f32 %v481_v26, %v261_v23  ;;  %v485_v29 = vmul.f32 %v481_v26, %v263_v24  ;;  %v484_v30 = vmul.f32 %v481_v26, %v262_v25  ;;  %v168_v63 = vld [vmem:[#allocation3 + $0x10] sm:$0xff]  ;;  %v169_v5 = vld [vmem:[#allocation3 + $0x18] sm:$0xff] }
  0x1b   :  { %v497_v33 = vstv %s496_s4  ;;  %v513_v26 = vld [vmem:[%s959_s5 + $0x18] sm:$0xff] }
  0x1c   :  { %v486_v31 = vmul.f32 1.442695, %v482_v27  ;;  %v488_v32 = vmul.f32 1.442695, %v483_v28  ;;  %v492_v34 = vmul.f32 1.442695, %v485_v29  ;;  %v501_v35 = vmul.f32 %v497_v33, %v263_v24 }
  0x1d   :  { %v490_v36 = vmul.f32 1.442695, %v484_v30  ;;  %v498_v37 = vmul.f32 %v497_v33, %v260_v22  ;;  %v499_v39 = vmul.f32 %v497_v33, %v261_v23  ;;  %v500_v41 = vmul.f32 %v497_v33, %v262_v25  ;;  %v511_v23 = vld [vmem:[%s959_s5 + $0x8] sm:$0xff]  ;;  %v510_v24 = vld [vmem:[%s959_s5] sm:$0xff] }
  0x1e   :  { %688 = vset.pattern.permute.xlu0 %v739_v21  ;;  %691 = vpow2.f32 %v486_v31  ;;  %v508_v38 = vmul.f32 1.442695, %v501_v35  ;;  %v265_v29 = vld [vmem:[%s962_s8 + $0x8] sm:$0xff]  ;;  %v264_v35 = vld [vmem:[%s962_s8] sm:$0xff] }
  0x1f   :  { %693 = vpow2.f32 %v488_v32  ;;  %v502_v40 = vmul.f32 1.442695, %v498_v37  ;;  %v504_v42 = vmul.f32 1.442695, %v499_v39  ;;  %v506_v44 = vmul.f32 1.442695, %v500_v41 }
  0x20   :  { %695 = vpow2.f32 %v492_v34  ;;  %v512_v34 = vld [vmem:[%s959_s5 + $0x10] sm:$0xff]  ;;  %v555_v39 = vld [vmem:[%s960_s6 + $0x8] sm:$0xff]  ;;  %v267_v41 = vld [vmem:[%s962_s8 + $0x18] sm:$0xff] }
  0x21   :  { %697 = vpow2.f32 %v490_v36 }
  0x22   :  { %699 = vpow2.f32 %v508_v38 }
  0x23   :  { %701 = vpow2.f32 %v502_v40 }
  0x24   :  { %703 = vpow2.f32 %v504_v42 }
  0x25   :  { %705 = vpow2.f32 %v506_v44 }
  0x2b   :  { %v692_v43 = vpop.eup %691 }
  0x2c   :  { %516 = vperm.xlu1 %687, %v692_v43   ;;  %v694_v45 = vpop.eup %693 }
  0x2d   :  { %v696_v46 = vpop.eup %695 }
  0x2e   :  { %531 = vperm.xlu0 %688, %v696_v46   ;;  %v698_v47 = vpop.eup %697  ;;  %v554_v46 = vld [vmem:[%s960_s6] sm:$0xff] }
  0x2f   :  { %v700_v48 = vpop.eup %699 }
  0x30   :  { %521 = vperm.xlu1 %687, %v694_v45   ;;  %v702_v49 = vpop.eup %701 }
  0x31   :  { %v704_v50 = vpop.eup %703 }
  0x32   :  { %575 = vperm.xlu0 %688, %v700_v48   ;;  %v706_v51 = vpop.eup %705 }
  0x34   :  { %526 = vperm.xlu1 %687, %v698_v47   ;;  %v266_v47 = vld [vmem:[%s962_s8 + $0x10] sm:$0xff] }
  0x38   :  { %560 = vperm.xlu1 %687, %v702_v49  }
  0x3c   :  { %565 = vperm.xlu1 %687, %v704_v50  }
  0x40   :  { %570 = vperm.xlu1 %687, %v706_v51  }
  0x72   :  { %v93_v9 = vpop.trf.xlu0 }
  0x73   :  { %646 = vmatprep.mubr.msk.bf16.mxu0 %vm101_vm1, %v93_v9  ;;  %v167_v9 = vld [vmem:[#allocation3 + $0x8] sm:$0xff] }
  0x76   :  { %v94_v10 = vpop.trf.xlu0 }
  0x77   :  { %647 = vmatmul.mubr.msk.bf16.vlgmr.msra.gmra.mxu0 %vm101_vm1, %v94_v10 }
  0x78   :  { %657 = vmatpush3.msra.mxu0 %v275_v13 }
  0x79   :  { %658 = vmatprep.subr.mxu0 %v274_v14 }
  0x7a   :  { %v186_v11 = vpop.trf.xlu0  ;;  %659 = vmatpush3.msra.mxu0 %v274_v14 }
  0x7b   :  { %652 = vmatprep.mubr.msk.bf16.mxu1 %vm101_vm1, %v186_v11  ;;  %660 = vmatprep.subr.mxu0 %v273_v15 }
  0x7c   :  { %661 = vmatpush3.msra.mxu0 %v273_v15 }
  0x7d   :  { %662 = vmatprep.subr.mxu0 %v272_v16 }
  0x7e   :  { %v187_v12 = vpop.trf.xlu0  ;;  %663 = vmatpush3.msra.mxu0 %v272_v16 }
  0x7f   :  { %653 = vmatmul.mubr.msk.bf16.vlgmr.msra.gmra.mxu1 %vm101_vm1, %v187_v12 }
  0x80   :  { %671 = vmatpush3.msra.mxu1 %v380_v17 }
  0x81   :  { %672 = vmatprep.subr.mxu1 %v379_v18 }
  0x82   :  { %673 = vmatpush3.msra.mxu1 %v379_v18 }
  0x83   :  { %674 = vmatprep.subr.mxu1 %v378_v19 }
  0x84   :  { %675 = vmatpush3.msra.mxu1 %v378_v19 }
  0x85   :  { %676 = vmatprep.subr.mxu1 %v377_v20 }
  0x86   :  { %677 = vmatpush3.msra.mxu1 %v377_v20 }
  0xa7   :  { %v517_v20 = vpop.permute.xlu1 %516 }
  0xa8   :  { %v534_v31 = vmul.f32 %v517_v20, %v510_v24 }
  0xa9   :  { %v532_v27 = vpop.permute.xlu0 %531 }
  0xaa   :  { %v537_v33 = vmul.f32 %v532_v27, %v513_v26 }
  0xab   :  { %v522_v21 = vpop.permute.xlu1 %521 }
  0xac   :  { %v535_v28 = vmul.f32 %v522_v21, %v511_v23 }
  0xaf   :  { %v527_v22 = vpop.permute.xlu1 %526 }
  0xb0   :  { %v536_v43 = vmul.f32 %v527_v22, %v512_v34 }
  0xb3   :  { %v561_v25 = vpop.permute.xlu1 %560 }
  0xb7   :  { %v566_v40 = vpop.permute.xlu1 %565 }
  0xb8   :  { %v579_v49 = vmul.f32 %v566_v40, %v555_v39 }
 0x137   :  { %v648_v53 = vpop.f32.mrf.mxu0 }
 0x138   :  { %v159_v55 = vadd.f32 %v648_v53, %v75_v52  ;;  %v557_v52 = vld [vmem:[%s960_s6 + $0x18] sm:$0xff]  ;;  %v576_v53 = vpop.permute.xlu0 %575 }
 0x139   :  { %v142_v56 = vpop.f32.mrf.mxu0 }
 0x13a   :  { %164 = vst.msk [vmem:[#allocation2 + $0x10] sm:$0xff] %vm58_vm0, %v159_v55  ;;  %v157_v58 = vadd.f32 %v142_v56, %v73_v54  ;;  %v578_v55 = vmul.f32 %v561_v25, %v554_v46 }
 0x13b   :  { %v649_v59 = vpop.f32.mrf.mxu0 }
 0x13c   :  { %162 = vst.msk [vmem:[#allocation2] sm:$0xff] %vm58_vm0, %v157_v58  ;;  %v160_v61 = vadd.f32 %v649_v59, %v76_v57  ;;  %v556_v58 = vld [vmem:[%s960_s6 + $0x10] sm:$0xff]  ;;  %v571_v59 = vpop.permute.xlu1 %570 }
 0x13d   :  { %v145_v62 = vpop.f32.mrf.mxu0 }
 0x13e   :  { %165 = vst.msk [vmem:[#allocation2 + $0x18] sm:$0xff] %vm58_vm0, %v160_v61  ;;  %v158_v0 = vadd.f32 %v145_v62, %v74_v60  ;;  %v581_v61 = vmul.f32 %v576_v53, %v557_v52 }
 0x13f   :  { %v654_v1 = vpop.f32.mrf.mxu1 }
 0x140   :  { %163 = vst.msk [vmem:[#allocation2 + $0x8] sm:$0xff] %vm58_vm0, %v158_v0  ;;  %v251_v3 = vadd.f32 %v654_v1, %v168_v63  ;;  %v580_v1 = vmul.f32 %v571_v59, %v556_v58 }
 0x141   :  { %v234_v4 = vpop.f32.mrf.mxu1  ;;  %v270_v14 = vld [vmem:[#allocation2 + $0x10] sm:$0xff] }
 0x142   :  { %255 = vst.msk [vmem:[#allocation3 + $0x10] sm:$0xff] %vm58_vm0, %v251_v3  ;;  %v249_v6 = vadd.f32 %v234_v4, %v166_v2 }
 0x143   :  { %v655_v7 = vpop.f32.mrf.mxu1  ;;  %v268_v8 = vld [vmem:[#allocation2] sm:$0xff] }
 0x144   :  { %253 = vst.msk [vmem:[#allocation3] sm:$0xff] %vm58_vm0, %v249_v6  ;;  %v252_v10 = vadd.f32 %v655_v7, %v169_v5  ;;  %664 = vmatprep.mubr.msk.f32.mxu0 %vm58_vm0, %v268_v8 }
 0x145   :  { %v237_v11 = vpop.f32.mrf.mxu1  ;;  %v271_v15 = vld [vmem:[#allocation2 + $0x18] sm:$0xff] }
 0x146   :  { %256 = vst.msk [vmem:[#allocation3 + $0x18] sm:$0xff] %vm58_vm0, %v252_v10  ;;  %v250_v12 = vadd.f32 %v237_v11, %v167_v9 }
 0x147   :  { %v269_v13 = vld [vmem:[#allocation2 + $0x8] sm:$0xff] }
 0x148   :  { %254 = vst.msk [vmem:[#allocation3 + $0x8] sm:$0xff] %vm58_vm0, %v250_v12  ;;  %665 = vmatmul.mubr.msk.f32.vlgmr.msra.gmra.mxu0 %vm58_vm0, %v269_v13 }
 0x149   :  { %667 = vmatprep.mubr.msk.f32.mxu0 %vm58_vm0, %v270_v14  ;;  %v375_v18 = vld [vmem:[#allocation3 + $0x10] sm:$0xff] }
 0x14b   :  { %v373_v16 = vld [vmem:[#allocation3] sm:$0xff] }
 0x14c   :  { %668 = vmatmul.mubr.msk.f32.gmra.mxu0 %vm58_vm0, %v271_v15  ;;  %678 = vmatprep.mubr.msk.f32.mxu1 %vm58_vm0, %v373_v16 }
 0x14d   :  { %v376_v19 = vld [vmem:[#allocation3 + $0x18] sm:$0xff] }
 0x14f   :  { %v374_v17 = vld [vmem:[#allocation3 + $0x8] sm:$0xff] }
 0x150   :  { %679 = vmatmul.mubr.msk.f32.vlgmr.msra.gmra.mxu1 %vm58_vm0, %v374_v17 }
 0x151   :  { %681 = vmatprep.mubr.msk.f32.mxu1 %vm58_vm0, %v375_v18 }
 0x154   :  { %682 = vmatmul.mubr.msk.f32.gmra.mxu1 %vm58_vm0, %v376_v19 }
 0x208   :  { %v666_v30 = vpop.f32.mrf.mxu0 }
 0x209   :  { %v539_v32 = vadd.f32 %v666_v30, %v535_v28 }
 0x20a   :  { %v354_v36 = vpop.f32.mrf.mxu0 }
 0x20b   :  { %v543_v37 = vadd.f32 %v539_v32, %v265_v29  ;;  %v538_v38 = vadd.f32 %v534_v31, %v354_v36 }
 0x20c   :  { %v669_v42 = vpop.f32.mrf.mxu0 }
 0x20d   :  { %707 = vtanh.f32 %v543_v37  ;;  %v542_v44 = vadd.f32 %v538_v38, %v264_v35  ;;  %v541_v45 = vadd.f32 %v669_v42, %v537_v33 }
 0x20e   :  { %v364_v48 = vpop.f32.mrf.mxu0 }
 0x20f   :  { %709 = vtanh.f32 %v542_v44  ;;  %v545_v50 = vadd.f32 %v541_v45, %v267_v41  ;;  %v540_v51 = vadd.f32 %v536_v43, %v364_v48 }
 0x210   :  { %v680_v54 = vpop.f32.mrf.mxu1 }
 0x211   :  { %711 = vtanh.f32 %v545_v50  ;;  %v544_v56 = vadd.f32 %v540_v51, %v266_v47  ;;  %v583_v57 = vadd.f32 %v680_v54, %v579_v49 }
 0x212   :  { %v459_v60 = vpop.f32.mrf.mxu1 }
 0x213   :  { %713 = vtanh.f32 %v544_v56  ;;  %v587_v62 = vadd.f32 %v583_v57, %v265_v29  ;;  %v582_v63 = vadd.f32 %v578_v55, %v459_v60 }
 0x214   :  { %v683_v0 = vpop.f32.mrf.mxu1 }
 0x215   :  { %715 = vtanh.f32 %v587_v62  ;;  %v586_v2 = vadd.f32 %v582_v63, %v264_v35  ;;  %v585_v3 = vadd.f32 %v683_v0, %v581_v61 }
 0x216   :  { %v469_v4 = vpop.f32.mrf.mxu1 }
 0x217   :  { %717 = vtanh.f32 %v586_v2  ;;  %v589_v5 = vadd.f32 %v585_v3, %v267_v41  ;;  %v584_v6 = vadd.f32 %v580_v1, %v469_v4 }
 0x219   :  { %719 = vtanh.f32 %v589_v5  ;;  %v588_v7 = vadd.f32 %v584_v6, %v266_v47 }
 0x21a   :  { %v708_v8 = vpop.eup %707 }
 0x21b   :  { %551 = vst.msk [vmem:[%s965_s11 + $0x8] sm:$0xff] %vm58_vm0, %v708_v8  ;;  %721 = vtanh.f32 %v588_v7 }
 0x21c   :  { %v710_v9 = vpop.eup %709 }
 0x21d   :  { %550 = vst.msk [vmem:[%s965_s11] sm:$0xff] %vm58_vm0, %v710_v9 }
 0x21e   :  { %v712_v10 = vpop.eup %711 }
 0x21f   :  { %553 = vst.msk [vmem:[%s965_s11 + $0x18] sm:$0xff] %vm58_vm0, %v712_v10 }
 0x220   :  { %v714_v11 = vpop.eup %713 }
 0x221   :  { %552 = vst.msk [vmem:[%s965_s11 + $0x10] sm:$0xff] %vm58_vm0, %v714_v11 }
 0x222   :  { %v716_v12 = vpop.eup %715 }
 0x223   :  { %595 = vst.msk [vmem:[%s966_s12 + $0x8] sm:$0xff] %vm58_vm0, %v716_v12 }
 0x224   :  { %v718_v13 = vpop.eup %717 }
 0x225   :  { %594 = vst.msk [vmem:[%s966_s12] sm:$0xff] %vm58_vm0, %v718_v13 }
 0x226   :  { %v720_v14 = vpop.eup %719 }
 0x227   :  { %597 = vst.msk [vmem:[%s966_s12 + $0x18] sm:$0xff] %vm58_vm0, %v720_v14 }
 0x228   :  { %v722_v15 = vpop.eup %721 }
 0x229   :  { %596 = vst.msk [vmem:[%s966_s12 + $0x10] sm:$0xff] %vm58_vm0, %v722_v15 }
 0x22a   :  { %606 = vsyncpa [#allocation5], 1 }

// kernel: cpmr_forward.8
= control target key start
LH: loop header
LB: loop body
LE: loop exit
PB: predicated region body
PF: predicated region fallthrough
CT: control target
= control target key end

     0   :  { %vm22_vm0 = vcmask 523264   ;;  %v247_v0 = vmov 0.0   ;;  %vm248_vm1 = vmmov 0   ;;  %vm40_vm2 = vcmask 261120   ;;  %s333_s1 = inlined_call_operand.vmem [shape: f32[32,64], index: 1, kind: input, shape index: {}]   ;;  %s334_s3 = inlined_call_operand.vmem [shape: f32[64,64], index: 3, kind: input, shape index: {}]   ;;  %s335_s0 = inlined_call_operand.vmem [shape: bf16[16,32], index: 0, kind: input, shape index: {}]   ;;  %s336_s2 = inlined_call_operand.vmem [shape: f32[16,64], index: 2, kind: input, shape index: {}]   ;;  %s337_s4 = inlined_call_operand.vmem [shape: f32[16,64], index: 4, kind: output, shape index: {}]  }
   0x1   :  { %213 = vmatprep.subr.bf16.mxu0 %v247_v0  ;;  %v31_v1 = vld [vmem:[%s333_s1 + $0x10] sm:$0xff]  ;;  %v32_v2 = vld [vmem:[%s333_s1 + $0x18] sm:$0xff]  ;;  %v29_v3 = vld [vmem:[%s333_s1] sm:$0xff]  ;;  %217 = vmatprep.mubr.msk.bf16.mxu0 %vm248_vm1, %v247_v0  ;;  %23 = vst.msk [vmem:[#allocation2] sm:$0xff] %vm22_vm0, %v247_v0 }
   0x2   :  { %24 = vst.msk [vmem:[#allocation2 + $0x8] sm:$0xff] %vm22_vm0, %v247_v0  ;;  %v34_v4 = vpack.c.bf16 %v32_v2, %v31_v1  ;;  %v30_v5 = vld [vmem:[%s333_s1 + $0x8] sm:$0xff]  ;;  %v102_v6 = vld [vmem:[%s334_s3 + $0x38] sm:$0xff]  ;;  %v242_v8 = vld [vmem:[%s335_s0] sm:$0xff]  }
   0x3   :  { %v33_v7 = vpack.c.bf16 %v30_v5, %v29_v3  ;;  %221 = vmatprep.subr.mxu1 %v102_v6  ;;  %v101_v9 = vld [vmem:[%s334_s3 + $0x30] sm:$0xff]  ;;  %v100_v10 = vld [vmem:[%s334_s3 + $0x28] sm:$0xff]  ;;  %v99_v11 = vld [vmem:[%s334_s3 + $0x20] sm:$0xff] }
   0x4   :  { %214 = vmatpush3.bf16.msra.mxu0 %v34_v4  ;;  %222 = vmatpush3.msra.mxu1 %v102_v6  ;;  %v98_v12 = vld [vmem:[%s334_s3 + $0x18] sm:$0xff]  ;;  %v97_v13 = vld [vmem:[%s334_s3 + $0x10] sm:$0xff]  ;;  %v96_v14 = vld [vmem:[%s334_s3 + $0x8] sm:$0xff] }
   0x5   :  { %215 = vmatprep.subr.bf16.mxu0 %v247_v0  ;;  %223 = vmatprep.subr.mxu1 %v101_v9  ;;  %v95_v15 = vld [vmem:[%s334_s3] sm:$0xff]  ;;  %v187_v28 = vld [vmem:[%s336_s2 + $0x8] sm:$0xff] }
   0x6   :  { %224 = vmatpush3.msra.mxu1 %v101_v9  ;;  %v186_v30 = vld [vmem:[%s336_s2] sm:$0xff] }
   0x7   :  { %225 = vmatprep.subr.mxu1 %v100_v10 }
   0x8   :  { %216 = vmatpush3.bf16.msra.mxu0 %v33_v7  ;;  %226 = vmatpush3.msra.mxu1 %v100_v10  ;;  %v25_v16 = vld [vmem:[#allocation2] sm:$0xff] }
   0x9   :  { %227 = vmatprep.subr.mxu1 %v99_v11  ;;  %v26_v20 = vld [vmem:[#allocation2 + $0x8] sm:$0xff] }
   0xa   :  { %228 = vmatpush3.msra.mxu1 %v99_v11 }
   0xb   :  { %218 = vmatmul.mubr.msk.bf16.vlgmr.msra.gmra.mxu0 %vm40_vm2, %v242_v8  ;;  %229 = vmatprep.subr.mxu1 %v98_v12 }
   0xc   :  { %230 = vmatpush3.msra.mxu1 %v98_v12 }
   0xd   :  { %231 = vmatprep.subr.mxu1 %v97_v13 }
   0xe   :  { %232 = vmatpush3.msra.mxu1 %v97_v13 }
   0xf   :  { %233 = vmatprep.subr.mxu1 %v96_v14 }
  0x10   :  { %234 = vmatpush3.msra.mxu1 %v96_v14 }
  0x11   :  { %235 = vmatprep.subr.mxu1 %v95_v15 }
  0x12   :  { %236 = vmatpush3.msra.mxu1 %v95_v15 }
  0xcb   :  { %v78_v17 = vpop.f32.mrf.mxu0 }
  0xcc   :  { %v85_v18 = vadd.f32 %v78_v17, %v25_v16 }
  0xcd   :  { %v219_v19 = vpop.f32.mrf.mxu0 }
  0xce   :  { %88 = vst.msk [vmem:[#allocation2] sm:$0xff] %vm22_vm0, %v85_v18 }
  0xcf   :  { %v81_v21 = vpop.f32.mrf.mxu0 }
  0xd0   :  { %v86_v22 = vadd.f32 %v81_v21, %v26_v20 }
  0xd1   :  { %v220_v23 = vpop.f32.mrf.mxu0 }
  0xd2   :  { %89 = vst.msk [vmem:[#allocation2 + $0x8] sm:$0xff] %vm22_vm0, %v86_v22 }
  0xd5   :  { %v93_v24 = vld [vmem:[#allocation2] sm:$0xff] }
  0xd6   :  { %237 = vmatprep.mubr.msk.f32.mxu1 %vm22_vm0, %v93_v24 }
  0xd9   :  { %v94_v25 = vld [vmem:[#allocation2 + $0x8] sm:$0xff] }
  0xda   :  { %238 = vmatmul.mubr.msk.f32.vlgmr.msra.gmra.mxu1 %vm22_vm0, %v94_v25 }
 0x19a   :  { %v239_v26 = vpop.f32.mrf.mxu1 }
 0x19b   :  { %243 = vtanh.f32 %v239_v26 }
 0x19c   :  { %v175_v27 = vpop.f32.mrf.mxu1 }
 0x19d   :  { %245 = vtanh.f32 %v175_v27 }
 0x1a8   :  { %v244_v29 = vpop.eup %243 }
 0x1a9   :  { %v189_v31 = vadd.f32 %v244_v29, %v187_v28 }
 0x1aa   :  { %v246_v32 = vpop.eup %245 }
 0x1ab   :  { %191 = vst.msk [vmem:[%s337_s4 + $0x8] sm:$0xff] %vm22_vm0, %v189_v31  ;;  %v188_v33 = vadd.f32 %v246_v32, %v186_v30 }
 0x1ad   :  { %190 = vst.msk [vmem:[%s337_s4] sm:$0xff] %vm22_vm0, %v188_v33 }

</bundles_post_ra>
